<compile_context>
chip_gen: v7x
topology: tpu7x:2x2x1
jax: 0.10.0
libtpu: 0.0.40
codegen_flags: <defaults>
</compile_context>

<pallas_src>
import jax
import jax.numpy as jnp
from jax.experimental import pallas as pl
from jax.experimental.pallas import tpu as pltpu

# ----- model hyper-parameters (small, consistent with the module) ------------
INPUT_SIZE = 16
HIDDEN_SIZE = 32
NUM_LAYERS = 2
OUTPUT_SIZE = 8
SEQ_LEN = 8
BATCH = 1          # module's h0/c0 have batch dim 1 -> forward requires batch 1
FC_LANES = 128     # lane-padded fc head width


# ----- Pallas kernel ----------------------------------------------------------
def _audio_lstm_kernel(x_ref, *args):
    """x_ref: (T, input_size).
    args: per-layer (w_ih_T, w_hh_T, bias) with gate cols [i|f|o|g],
          then (w_fc_T padded, b_fc padded), then out_ref, then gx0 scratch."""
    n_params = 3 * NUM_LAYERS + 2
    params = args[:n_params]
    out_ref = args[n_params]
    gx0_ref = args[n_params + 1]          # VMEM scratch (T, 4H)

    H = HIDDEN_SIZE
    T = SEQ_LEN

    # Load all (tiny) weights once; they stay vreg/VMEM resident.
    w_ih = [params[3 * l][...] for l in range(NUM_LAYERS)]      # (in_l, 4H)
    w_hh = [params[3 * l + 1][...] for l in range(NUM_LAYERS)]  # (H, 4H)
    bias = [params[3 * l + 2][...] for l in range(NUM_LAYERS)]  # (1, 4H)
    w_fc = params[3 * NUM_LAYERS][...]                          # (H, FC_LANES)
    b_fc = params[3 * NUM_LAYERS + 1][...]                      # (1, FC_LANES)

    # Hoisted layer-0 input projection -> VMEM scratch (row reads in the loop
    # go through the load slots, keeping the vex slot free for vmatmul pushes).
    gx0_ref[...] = (
        jnp.dot(x_ref[...], w_ih[0], preferred_element_type=jnp.float32) + bias[0]
    )

    def lstm_cell(gates, c_prev):
        # gate order [i | f | o | g]: one sigmoid over 3H lanes, one tanh over H.
        sfo = jax.nn.sigmoid(gates[:, : 3 * H])
        g_g = jnp.tanh(gates[:, 3 * H:])
        i_g = sfo[:, 0 * H:1 * H]
        f_g = sfo[:, 1 * H:2 * H]
        o_g = sfo[:, 2 * H:3 * H]
        c_new = f_g * c_prev + i_g * g_g
        h_new = o_g * jnp.tanh(c_new)
        return h_new, c_new

    h = [jnp.zeros((1, H), jnp.float32) for _ in range(NUM_LAYERS)]
    c = [jnp.zeros((1, H), jnp.float32) for _ in range(NUM_LAYERS)]

    # Wavefront-interleaved, fully unrolled recurrence (T static & small).
    # Layer l step t follows layer l-1 step t; layer l step t is independent of
    # layer l-1 step t+1, so consecutive statements here can overlap on the
    # MXU / EUP / VPU slots.
    for t in range(T):
        # ---- layer 0, step t
        gates0 = gx0_ref[pl.ds(t, 1), :] + jnp.dot(
            h[0], w_hh[0], preferred_element_type=jnp.float32
        )
        h[0], c[0] = lstm_cell(gates0, c[0])
        # ---- deeper layers, step t (input = h of layer below, just produced)
        for l in range(1, NUM_LAYERS):
            gates = (
                bias[l]
                + jnp.dot(h[l - 1], w_ih[l], preferred_element_type=jnp.float32)
                + jnp.dot(h[l], w_hh[l], preferred_element_type=jnp.float32)
            )
            h[l], c[l] = lstm_cell(gates, c[l])

    # fc head on the final layer's last hidden state; lane-padded full store.
    out_ref[...] = (
        jnp.dot(h[-1], w_fc, preferred_element_type=jnp.float32) + b_fc
    )


# ----- one-time parameter preprocessing (outside jit) -------------------------
def prepare_params(params):
    """Transpose weights, fold biases, permute gate order, lane-pad fc head.

    PyTorch gate order along 4H is [i|f|g|o]; reordered to [i|f|o|g] so the
    three sigmoid gates are contiguous in lanes."""
    H = HIDDEN_SIZE
    perm = jnp.concatenate([
        jnp.arange(0 * H, 1 * H),   # i
        jnp.arange(1 * H, 2 * H),   # f
        jnp.arange(3 * H, 4 * H),   # o
        jnp.arange(2 * H, 3 * H),   # g
    ])
    prepared = []
    for l in range(NUM_LAYERS):
        w_ih, w_hh, b_ih, b_hh = params["lstm"][l]
        prepared.append(jnp.asarray(w_ih[perm].T))                   # (in_l, 4H)
        prepared.append(jnp.asarray(w_hh[perm].T))                   # (H, 4H)
        prepared.append(jnp.asarray((b_ih + b_hh)[perm][None, :]))   # (1, 4H)
    w_fc, b_fc = params["fc"]
    w_fc_pad = jnp.zeros((H, FC_LANES), jnp.float32).at[:, :OUTPUT_SIZE].set(
        jnp.asarray(w_fc.T)
    )
    b_fc_pad = jnp.zeros((1, FC_LANES), jnp.float32).at[:, :OUTPUT_SIZE].set(
        jnp.asarray(b_fc)
    )
    prepared.append(w_fc_pad)   # (H, 128)
    prepared.append(b_fc_pad)   # (1, 128)
    return prepared


# ----- wrapper ----------------------------------------------------------------
@jax.jit
def audio_lstm_forward(x, prepared):
    """x: (1, T, input_size) float32, prepared: list from prepare_params.
    Returns (1, output_size) float32."""
    x2d = x[0]  # (T, input_size)
    n_in = 1 + len(prepared)
    vmem_spec = pl.BlockSpec(memory_space=pltpu.MemorySpace.VMEM)
    out_pad = pl.pallas_call(
        _audio_lstm_kernel,
        out_shape=jax.ShapeDtypeStruct((1, FC_LANES), jnp.float32),
        in_specs=[vmem_spec] * n_in,
        out_specs=vmem_spec,
        scratch_shapes=[pltpu.VMEM((SEQ_LEN, 4 * HIDDEN_SIZE), jnp.float32)],
    )(x2d, *prepared)
    return out_pad[:, :OUTPUT_SIZE]


# ----- pure-JAX reference (mirrors PyTorch nn.LSTM semantics) ------------------
def audio_lstm_reference(x, params):
    seq = x[0]  # (T, in)
    H = HIDDEN_SIZE
    for l in range(NUM_LAYERS):
        w_ih, w_hh, b_ih, b_hh = params["lstm"][l]
        h = jnp.zeros((H,), jnp.float32)
        c = jnp.zeros((H,), jnp.float32)
        outs = []
        for t in range(seq.shape[0]):
            gates = seq[t] @ w_ih.T + b_ih + h @ w_hh.T + b_hh
            i_g = jax.nn.sigmoid(gates[0 * H:1 * H])
            f_g = jax.nn.sigmoid(gates[1 * H:2 * H])
            g_g = jnp.tanh(gates[2 * H:3 * H])
            o_g = jax.nn.sigmoid(gates[3 * H:4 * H])
            c = f_g * c + i_g * g_g
            h = o_g * jnp.tanh(c)
            outs.append(h)
        seq = jnp.stack(outs)
    w_fc, b_fc = params["fc"]
    return (seq[-1] @ w_fc.T + b_fc)[None, :]


# ----- deterministic parameter init (shapes per nn.LSTM / nn.Linear) -----------
def init_params(key):
    params = {"lstm": [], "fc": None}
    k = 1.0 / jnp.sqrt(jnp.float32(HIDDEN_SIZE))
    for l in range(NUM_LAYERS):
        in_l = INPUT_SIZE if l == 0 else HIDDEN_SIZE
        key, k1, k2, k3, k4 = jax.random.split(key, 5)
        w_ih = jax.random.uniform(k1, (4 * HIDDEN_SIZE, in_l), jnp.float32, -k, k)
        w_hh = jax.random.uniform(k2, (4 * HIDDEN_SIZE, HIDDEN_SIZE), jnp.float32, -k, k)
        b_ih = jax.random.uniform(k3, (4 * HIDDEN_SIZE,), jnp.float32, -k, k)
        b_hh = jax.random.uniform(k4, (4 * HIDDEN_SIZE,), jnp.float32, -k, k)
        params["lstm"].append((w_ih, w_hh, b_ih, b_hh))
    key, k5, k6 = jax.random.split(key, 3)
    kf = 1.0 / jnp.sqrt(jnp.float32(HIDDEN_SIZE))
    w_fc = jax.random.uniform(k5, (OUTPUT_SIZE, HIDDEN_SIZE), jnp.float32, -kf, kf)
    b_fc = jax.random.uniform(k6, (OUTPUT_SIZE,), jnp.float32, -kf, kf)
    params["fc"] = (w_fc, b_fc)
    return params


if __name__ == "__main__":
    key = jax.random.PRNGKey(0)
    key, kx = jax.random.split(key)
    x = jax.random.normal(kx, (BATCH, SEQ_LEN, INPUT_SIZE), jnp.float32)
    params = init_params(key)

    # One-time weight preprocessing (transpose / gate-permute / bias-fold / pad).
    prepared = prepare_params(params)

    out = audio_lstm_forward(x, prepared)
    out = jax.block_until_ready(out)

    ref = audio_lstm_reference(x, params)
    assert out.shape == (BATCH, OUTPUT_SIZE)
    assert jnp.allclose(out, ref, rtol=1e-5, atol=1e-5), (out, ref)

    print("KERNEL_OK")
</pallas_src>

<mosaic_0001>
module attributes {stable_mosaic.version = 11 : i64} {
  func.func @_audio_lstm_kernel(%arg0: memref<8x16xf32, #tpu.memory_space<vmem>>, %arg1: memref<16x128xf32, #tpu.memory_space<vmem>>, %arg2: memref<32x128xf32, #tpu.memory_space<vmem>>, %arg3: memref<1x128xf32, #tpu.memory_space<vmem>>, %arg4: memref<32x128xf32, #tpu.memory_space<vmem>>, %arg5: memref<32x128xf32, #tpu.memory_space<vmem>>, %arg6: memref<1x128xf32, #tpu.memory_space<vmem>>, %arg7: memref<32x128xf32, #tpu.memory_space<vmem>>, %arg8: memref<1x128xf32, #tpu.memory_space<vmem>>, %arg9: memref<1x128xf32, #tpu.memory_space<vmem>>, %arg10: memref<8x128xf32, #tpu.memory_space<vmem>>) attributes {dimension_semantics = [], scalar_prefetch = 0 : i64, scratch_operands = 1 : i64, tpu.core_type = #tpu.core_type<tc>} {
    %c0 = arith.constant 0 : index
    %c0_0 = arith.constant 0 : index
    %0 = vector.load %arg1[%c0, %c0_0] : memref<16x128xf32, #tpu.memory_space<vmem>>, vector<16x128xf32>
    %c0_1 = arith.constant 0 : index
    %c0_2 = arith.constant 0 : index
    %1 = vector.load %arg4[%c0_1, %c0_2] : memref<32x128xf32, #tpu.memory_space<vmem>>, vector<32x128xf32>
    %c0_3 = arith.constant 0 : index
    %c0_4 = arith.constant 0 : index
    %2 = vector.load %arg2[%c0_3, %c0_4] : memref<32x128xf32, #tpu.memory_space<vmem>>, vector<32x128xf32>
    %c0_5 = arith.constant 0 : index
    %c0_6 = arith.constant 0 : index
    %3 = vector.load %arg5[%c0_5, %c0_6] : memref<32x128xf32, #tpu.memory_space<vmem>>, vector<32x128xf32>
    %c0_7 = arith.constant 0 : index
    %c0_8 = arith.constant 0 : index
    %4 = vector.load %arg3[%c0_7, %c0_8] : memref<1x128xf32, #tpu.memory_space<vmem>>, vector<1x128xf32>
    %c0_9 = arith.constant 0 : index
    %c0_10 = arith.constant 0 : index
    %5 = vector.load %arg6[%c0_9, %c0_10] : memref<1x128xf32, #tpu.memory_space<vmem>>, vector<1x128xf32>
    %c0_11 = arith.constant 0 : index
    %c0_12 = arith.constant 0 : index
    %6 = vector.load %arg7[%c0_11, %c0_12] : memref<32x128xf32, #tpu.memory_space<vmem>>, vector<32x128xf32>
    %c0_13 = arith.constant 0 : index
    %c0_14 = arith.constant 0 : index
    %7 = vector.load %arg8[%c0_13, %c0_14] : memref<1x128xf32, #tpu.memory_space<vmem>>, vector<1x128xf32>
    %c0_15 = arith.constant 0 : index
    %c0_16 = arith.constant 0 : index
    %8 = vector.load %arg0[%c0_15, %c0_16] : memref<8x16xf32, #tpu.memory_space<vmem>>, vector<8x16xf32>
    %cst = arith.constant dense<0.000000e+00> : vector<8x128xf32>
    %9 = tpu.matmul %8, %0, %cst {dimension_numbers = #tpu.dot_dimension_numbers<[1], [0], [0], [1], [0, 0, 1, 1], [], []>} : vector<8x16xf32>, vector<16x128xf32>, vector<8x128xf32> -> vector<8x128xf32>
    %10 = vector.broadcast %4 : vector<1x128xf32> to vector<8x128xf32>
    %11 = arith.addf %9, %10 : vector<8x128xf32>
    %c0_17 = arith.constant 0 : index
    %c0_18 = arith.constant 0 : index
    %12 = vector.load %arg10[%c0_17, %c0_18] : memref<8x128xf32, #tpu.memory_space<vmem>>, vector<8x128xf32>
    tpu.vector_store %arg10[%c0_17, %c0_18], %11 {strides = array<i32>} : memref<8x128xf32, #tpu.memory_space<vmem>>, vector<8x128xf32>,
    %cst_19 = arith.constant 0.000000e+00 : f32
    %13 = vector.broadcast %cst_19 : f32 to vector<1x32xf32>
    %cst_20 = arith.constant 0.000000e+00 : f32
    %14 = vector.broadcast %cst_20 : f32 to vector<1x32xf32>
    %cst_21 = arith.constant 0.000000e+00 : f32
    %15 = vector.broadcast %cst_21 : f32 to vector<1x32xf32>
    %cst_22 = arith.constant 0.000000e+00 : f32
    %16 = vector.broadcast %cst_22 : f32 to vector<1x32xf32>
    %c0_23 = arith.constant 0 : index
    %c0_24 = arith.constant 0 : index
    %17 = vector.load %arg10[%c0_23, %c0_24] : memref<8x128xf32, #tpu.memory_space<vmem>>, vector<1x128xf32>
    %cst_25 = arith.constant dense<0.000000e+00> : vector<1x128xf32>
    %18 = tpu.matmul %13, %2, %cst_25 {dimension_numbers = #tpu.dot_dimension_numbers<[1], [0], [0], [1], [0, 0, 1, 1], [], []>} : vector<1x32xf32>, vector<32x128xf32>, vector<1x128xf32> -> vector<1x128xf32>
    %19 = arith.addf %17, %18 : vector<1x128xf32>
    %20 = vector.extract_strided_slice %19 {offsets = [0, 0], sizes = [1, 96], strides = [1, 1]} : vector<1x128xf32> to vector<1x96xf32>
    %21 = arith.negf %20 : vector<1x96xf32>
    %22 = math.exp %21 : vector<1x96xf32>
    %cst_26 = arith.constant 1.000000e+00 : f32
    %23 = vector.broadcast %cst_26 : f32 to vector<1x96xf32>
    %24 = arith.addf %23, %22 : vector<1x96xf32>
    %25 = arith.divf %23, %24 : vector<1x96xf32>
    %26 = vector.extract_strided_slice %19 {offsets = [0, 96], sizes = [1, 32], strides = [1, 1]} : vector<1x128xf32> to vector<1x32xf32>
    %27 = math.tanh %26 : vector<1x32xf32>
    %28 = vector.extract_strided_slice %25 {offsets = [0, 0], sizes = [1, 32], strides = [1, 1]} : vector<1x96xf32> to vector<1x32xf32>
    %29 = vector.extract_strided_slice %25 {offsets = [0, 32], sizes = [1, 32], strides = [1, 1]} : vector<1x96xf32> to vector<1x32xf32>
    %30 = vector.extract_strided_slice %25 {offsets = [0, 64], sizes = [1, 32], strides = [1, 1]} : vector<1x96xf32> to vector<1x32xf32>
    %31 = arith.mulf %29, %15 : vector<1x32xf32>
    %32 = arith.mulf %28, %27 : vector<1x32xf32>
    %33 = arith.addf %31, %32 : vector<1x32xf32>
    %34 = math.tanh %33 : vector<1x32xf32>
    %35 = arith.mulf %30, %34 : vector<1x32xf32>
    %cst_27 = arith.constant dense<0.000000e+00> : vector<1x128xf32>
    %36 = tpu.matmul %35, %1, %cst_27 {dimension_numbers = #tpu.dot_dimension_numbers<[1], [0], [0], [1], [0, 0, 1, 1], [], []>} : vector<1x32xf32>, vector<32x128xf32>, vector<1x128xf32> -> vector<1x128xf32>
    %37 = arith.addf %5, %36 : vector<1x128xf32>
    %cst_28 = arith.constant dense<0.000000e+00> : vector<1x128xf32>
    %38 = tpu.matmul %14, %3, %cst_28 {dimension_numbers = #tpu.dot_dimension_numbers<[1], [0], [0], [1], [0, 0, 1, 1], [], []>} : vector<1x32xf32>, vector<32x128xf32>, vector<1x128xf32> -> vector<1x128xf32>
    %39 = arith.addf %37, %38 : vector<1x128xf32>
    %40 = vector.extract_strided_slice %39 {offsets = [0, 0], sizes = [1, 96], strides = [1, 1]} : vector<1x128xf32> to vector<1x96xf32>
    %41 = arith.negf %40 : vector<1x96xf32>
    %42 = math.exp %41 : vector<1x96xf32>
    %cst_29 = arith.constant 1.000000e+00 : f32
    %43 = vector.broadcast %cst_29 : f32 to vector<1x96xf32>
    %44 = arith.addf %43, %42 : vector<1x96xf32>
    %45 = arith.divf %43, %44 : vector<1x96xf32>
    %46 = vector.extract_strided_slice %39 {offsets = [0, 96], sizes = [1, 32], strides = [1, 1]} : vector<1x128xf32> to vector<1x32xf32>
    %47 = math.tanh %46 : vector<1x32xf32>
    %48 = vector.extract_strided_slice %45 {offsets = [0, 0], sizes = [1, 32], strides = [1, 1]} : vector<1x96xf32> to vector<1x32xf32>
    %49 = vector.extract_strided_slice %45 {offsets = [0, 32], sizes = [1, 32], strides = [1, 1]} : vector<1x96xf32> to vector<1x32xf32>
    %50 = vector.extract_strided_slice %45 {offsets = [0, 64], sizes = [1, 32], strides = [1, 1]} : vector<1x96xf32> to vector<1x32xf32>
    %51 = arith.mulf %49, %16 : vector<1x32xf32>
    %52 = arith.mulf %48, %47 : vector<1x32xf32>
    %53 = arith.addf %51, %52 : vector<1x32xf32>
    %54 = math.tanh %53 : vector<1x32xf32>
    %55 = arith.mulf %50, %54 : vector<1x32xf32>
    %c1 = arith.constant 1 : index
    %c0_30 = arith.constant 0 : index
    %56 = vector.load %arg10[%c1, %c0_30] : memref<8x128xf32, #tpu.memory_space<vmem>>, vector<1x128xf32>
    %cst_31 = arith.constant dense<0.000000e+00> : vector<1x128xf32>
    %57 = tpu.matmul %35, %2, %cst_31 {dimension_numbers = #tpu.dot_dimension_numbers<[1], [0], [0], [1], [0, 0, 1, 1], [], []>} : vector<1x32xf32>, vector<32x128xf32>, vector<1x128xf32> -> vector<1x128xf32>
    %58 = arith.addf %56, %57 : vector<1x128xf32>
    %59 = vector.extract_strided_slice %58 {offsets = [0, 0], sizes = [1, 96], strides = [1, 1]} : vector<1x128xf32> to vector<1x96xf32>
    %60 = arith.negf %59 : vector<1x96xf32>
    %61 = math.exp %60 : vector<1x96xf32>
    %cst_32 = arith.constant 1.000000e+00 : f32
    %62 = vector.broadcast %cst_32 : f32 to vector<1x96xf32>
    %63 = arith.addf %62, %61 : vector<1x96xf32>
    %64 = arith.divf %62, %63 : vector<1x96xf32>
    %65 = vector.extract_strided_slice %58 {offsets = [0, 96], sizes = [1, 32], strides = [1, 1]} : vector<1x128xf32> to vector<1x32xf32>
    %66 = math.tanh %65 : vector<1x32xf32>
    %67 = vector.extract_strided_slice %64 {offsets = [0, 0], sizes = [1, 32], strides = [1, 1]} : vector<1x96xf32> to vector<1x32xf32>
    %68 = vector.extract_strided_slice %64 {offsets = [0, 32], sizes = [1, 32], strides = [1, 1]} : vector<1x96xf32> to vector<1x32xf32>
    %69 = vector.extract_strided_slice %64 {offsets = [0, 64], sizes = [1, 32], strides = [1, 1]} : vector<1x96xf32> to vector<1x32xf32>
    %70 = arith.mulf %68, %33 : vector<1x32xf32>
    %71 = arith.mulf %67, %66 : vector<1x32xf32>
    %72 = arith.addf %70, %71 : vector<1x32xf32>
    %73 = math.tanh %72 : vector<1x32xf32>
    %74 = arith.mulf %69, %73 : vector<1x32xf32>
    %cst_33 = arith.constant dense<0.000000e+00> : vector<1x128xf32>
    %75 = tpu.matmul %74, %1, %cst_33 {dimension_numbers = #tpu.dot_dimension_numbers<[1], [0], [0], [1], [0, 0, 1, 1], [], []>} : vector<1x32xf32>, vector<32x128xf32>, vector<1x128xf32> -> vector<1x128xf32>
    %76 = arith.addf %5, %75 : vector<1x128xf32>
    %cst_34 = arith.constant dense<0.000000e+00> : vector<1x128xf32>
    %77 = tpu.matmul %55, %3, %cst_34 {dimension_numbers = #tpu.dot_dimension_numbers<[1], [0], [0], [1], [0, 0, 1, 1], [], []>} : vector<1x32xf32>, vector<32x128xf32>, vector<1x128xf32> -> vector<1x128xf32>
    %78 = arith.addf %76, %77 : vector<1x128xf32>
    %79 = vector.extract_strided_slice %78 {offsets = [0, 0], sizes = [1, 96], strides = [1, 1]} : vector<1x128xf32> to vector<1x96xf32>
    %80 = arith.negf %79 : vector<1x96xf32>
    %81 = math.exp %80 : vector<1x96xf32>
    %cst_35 = arith.constant 1.000000e+00 : f32
    %82 = vector.broadcast %cst_35 : f32 to vector<1x96xf32>
    %83 = arith.addf %82, %81 : vector<1x96xf32>
    %84 = arith.divf %82, %83 : vector<1x96xf32>
    %85 = vector.extract_strided_slice %78 {offsets = [0, 96], sizes = [1, 32], strides = [1, 1]} : vector<1x128xf32> to vector<1x32xf32>
    %86 = math.tanh %85 : vector<1x32xf32>
    %87 = vector.extract_strided_slice %84 {offsets = [0, 0], sizes = [1, 32], strides = [1, 1]} : vector<1x96xf32> to vector<1x32xf32>
    %88 = vector.extract_strided_slice %84 {offsets = [0, 32], sizes = [1, 32], strides = [1, 1]} : vector<1x96xf32> to vector<1x32xf32>
    %89 = vector.extract_strided_slice %84 {offsets = [0, 64], sizes = [1, 32], strides = [1, 1]} : vector<1x96xf32> to vector<1x32xf32>
    %90 = arith.mulf %88, %53 : vector<1x32xf32>
    %91 = arith.mulf %87, %86 : vector<1x32xf32>
    %92 = arith.addf %90, %91 : vector<1x32xf32>
    %93 = math.tanh %92 : vector<1x32xf32>
    %94 = arith.mulf %89, %93 : vector<1x32xf32>
    %c2 = arith.constant 2 : index
    %c0_36 = arith.constant 0 : index
    %95 = vector.load %arg10[%c2, %c0_36] : memref<8x128xf32, #tpu.memory_space<vmem>>, vector<1x128xf32>
    %cst_37 = arith.constant dense<0.000000e+00> : vector<1x128xf32>
    %96 = tpu.matmul %74, %2, %cst_37 {dimension_numbers = #tpu.dot_dimension_numbers<[1], [0], [0], [1], [0, 0, 1, 1], [], []>} : vector<1x32xf32>, vector<32x128xf32>, vector<1x128xf32> -> vector<1x128xf32>
    %97 = arith.addf %95, %96 : vector<1x128xf32>
    %98 = vector.extract_strided_slice %97 {offsets = [0, 0], sizes = [1, 96], strides = [1, 1]} : vector<1x128xf32> to vector<1x96xf32>
    %99 = arith.negf %98 : vector<1x96xf32>
    %100 = math.exp %99 : vector<1x96xf32>
    %cst_38 = arith.constant 1.000000e+00 : f32
    %101 = vector.broadcast %cst_38 : f32 to vector<1x96xf32>
    %102 = arith.addf %101, %100 : vector<1x96xf32>
    %103 = arith.divf %101, %102 : vector<1x96xf32>
    %104 = vector.extract_strided_slice %97 {offsets = [0, 96], sizes = [1, 32], strides = [1, 1]} : vector<1x128xf32> to vector<1x32xf32>
    %105 = math.tanh %104 : vector<1x32xf32>
    %106 = vector.extract_strided_slice %103 {offsets = [0, 0], sizes = [1, 32], strides = [1, 1]} : vector<1x96xf32> to vector<1x32xf32>
    %107 = vector.extract_strided_slice %103 {offsets = [0, 32], sizes = [1, 32], strides = [1, 1]} : vector<1x96xf32> to vector<1x32xf32>
    %108 = vector.extract_strided_slice %103 {offsets = [0, 64], sizes = [1, 32], strides = [1, 1]} : vector<1x96xf32> to vector<1x32xf32>
    %109 = arith.mulf %107, %72 : vector<1x32xf32>
    %110 = arith.mulf %106, %105 : vector<1x32xf32>
    %111 = arith.addf %109, %110 : vector<1x32xf32>
    %112 = math.tanh %111 : vector<1x32xf32>
    %113 = arith.mulf %108, %112 : vector<1x32xf32>
    %cst_39 = arith.constant dense<0.000000e+00> : vector<1x128xf32>
    %114 = tpu.matmul %113, %1, %cst_39 {dimension_numbers = #tpu.dot_dimension_numbers<[1], [0], [0], [1], [0, 0, 1, 1], [], []>} : vector<1x32xf32>, vector<32x128xf32>, vector<1x128xf32> -> vector<1x128xf32>
    %115 = arith.addf %5, %114 : vector<1x128xf32>
    %cst_40 = arith.constant dense<0.000000e+00> : vector<1x128xf32>
    %116 = tpu.matmul %94, %3, %cst_40 {dimension_numbers = #tpu.dot_dimension_numbers<[1], [0], [0], [1], [0, 0, 1, 1], [], []>} : vector<1x32xf32>, vector<32x128xf32>, vector<1x128xf32> -> vector<1x128xf32>
    %117 = arith.addf %115, %116 : vector<1x128xf32>
    %118 = vector.extract_strided_slice %117 {offsets = [0, 0], sizes = [1, 96], strides = [1, 1]} : vector<1x128xf32> to vector<1x96xf32>
    %119 = arith.negf %118 : vector<1x96xf32>
    %120 = math.exp %119 : vector<1x96xf32>
    %cst_41 = arith.constant 1.000000e+00 : f32
    %121 = vector.broadcast %cst_41 : f32 to vector<1x96xf32>
    %122 = arith.addf %121, %120 : vector<1x96xf32>
    %123 = arith.divf %121, %122 : vector<1x96xf32>
    %124 = vector.extract_strided_slice %117 {offsets = [0, 96], sizes = [1, 32], strides = [1, 1]} : vector<1x128xf32> to vector<1x32xf32>
    %125 = math.tanh %124 : vector<1x32xf32>
    %126 = vector.extract_strided_slice %123 {offsets = [0, 0], sizes = [1, 32], strides = [1, 1]} : vector<1x96xf32> to vector<1x32xf32>
    %127 = vector.extract_strided_slice %123 {offsets = [0, 32], sizes = [1, 32], strides = [1, 1]} : vector<1x96xf32> to vector<1x32xf32>
    %128 = vector.extract_strided_slice %123 {offsets = [0, 64], sizes = [1, 32], strides = [1, 1]} : vector<1x96xf32> to vector<1x32xf32>
    %129 = arith.mulf %127, %92 : vector<1x32xf32>
    %130 = arith.mulf %126, %125 : vector<1x32xf32>
    %131 = arith.addf %129, %130 : vector<1x32xf32>
    %132 = math.tanh %131 : vector<1x32xf32>
    %133 = arith.mulf %128, %132 : vector<1x32xf32>
    %c3 = arith.constant 3 : index
    %c0_42 = arith.constant 0 : index
    %134 = vector.load %arg10[%c3, %c0_42] : memref<8x128xf32, #tpu.memory_space<vmem>>, vector<1x128xf32>
    %cst_43 = arith.constant dense<0.000000e+00> : vector<1x128xf32>
    %135 = tpu.matmul %113, %2, %cst_43 {dimension_numbers = #tpu.dot_dimension_numbers<[1], [0], [0], [1], [0, 0, 1, 1], [], []>} : vector<1x32xf32>, vector<32x128xf32>, vector<1x128xf32> -> vector<1x128xf32>
    %136 = arith.addf %134, %135 : vector<1x128xf32>
    %137 = vector.extract_strided_slice %136 {offsets = [0, 0], sizes = [1, 96], strides = [1, 1]} : vector<1x128xf32> to vector<1x96xf32>
    %138 = arith.negf %137 : vector<1x96xf32>
    %139 = math.exp %138 : vector<1x96xf32>
    %cst_44 = arith.constant 1.000000e+00 : f32
    %140 = vector.broadcast %cst_44 : f32 to vector<1x96xf32>
    %141 = arith.addf %140, %139 : vector<1x96xf32>
    %142 = arith.divf %140, %141 : vector<1x96xf32>
    %143 = vector.extract_strided_slice %136 {offsets = [0, 96], sizes = [1, 32], strides = [1, 1]} : vector<1x128xf32> to vector<1x32xf32>
    %144 = math.tanh %143 : vector<1x32xf32>
    %145 = vector.extract_strided_slice %142 {offsets = [0, 0], sizes = [1, 32], strides = [1, 1]} : vector<1x96xf32> to vector<1x32xf32>
    %146 = vector.extract_strided_slice %142 {offsets = [0, 32], sizes = [1, 32], strides = [1, 1]} : vector<1x96xf32> to vector<1x32xf32>
    %147 = vector.extract_strided_slice %142 {offsets = [0, 64], sizes = [1, 32], strides = [1, 1]} : vector<1x96xf32> to vector<1x32xf32>
    %148 = arith.mulf %146, %111 : vector<1x32xf32>
    %149 = arith.mulf %145, %144 : vector<1x32xf32>
    %150 = arith.addf %148, %149 : vector<1x32xf32>
    %151 = math.tanh %150 : vector<1x32xf32>
    %152 = arith.mulf %147, %151 : vector<1x32xf32>
    %cst_45 = arith.constant dense<0.000000e+00> : vector<1x128xf32>
    %153 = tpu.matmul %152, %1, %cst_45 {dimension_numbers = #tpu.dot_dimension_numbers<[1], [0], [0], [1], [0, 0, 1, 1], [], []>} : vector<1x32xf32>, vector<32x128xf32>, vector<1x128xf32> -> vector<1x128xf32>
    %154 = arith.addf %5, %153 : vector<1x128xf32>
    %cst_46 = arith.constant dense<0.000000e+00> : vector<1x128xf32>
    %155 = tpu.matmul %133, %3, %cst_46 {dimension_numbers = #tpu.dot_dimension_numbers<[1], [0], [0], [1], [0, 0, 1, 1], [], []>} : vector<1x32xf32>, vector<32x128xf32>, vector<1x128xf32> -> vector<1x128xf32>
    %156 = arith.addf %154, %155 : vector<1x128xf32>
    %157 = vector.extract_strided_slice %156 {offsets = [0, 0], sizes = [1, 96], strides = [1, 1]} : vector<1x128xf32> to vector<1x96xf32>
    %158 = arith.negf %157 : vector<1x96xf32>
    %159 = math.exp %158 : vector<1x96xf32>
    %cst_47 = arith.constant 1.000000e+00 : f32
    %160 = vector.broadcast %cst_47 : f32 to vector<1x96xf32>
    %161 = arith.addf %160, %159 : vector<1x96xf32>
    %162 = arith.divf %160, %161 : vector<1x96xf32>
    %163 = vector.extract_strided_slice %156 {offsets = [0, 96], sizes = [1, 32], strides = [1, 1]} : vector<1x128xf32> to vector<1x32xf32>
    %164 = math.tanh %163 : vector<1x32xf32>
    %165 = vector.extract_strided_slice %162 {offsets = [0, 0], sizes = [1, 32], strides = [1, 1]} : vector<1x96xf32> to vector<1x32xf32>
    %166 = vector.extract_strided_slice %162 {offsets = [0, 32], sizes = [1, 32], strides = [1, 1]} : vector<1x96xf32> to vector<1x32xf32>
    %167 = vector.extract_strided_slice %162 {offsets = [0, 64], sizes = [1, 32], strides = [1, 1]} : vector<1x96xf32> to vector<1x32xf32>
    %168 = arith.mulf %166, %131 : vector<1x32xf32>
    %169 = arith.mulf %165, %164 : vector<1x32xf32>
    %170 = arith.addf %168, %169 : vector<1x32xf32>
    %171 = math.tanh %170 : vector<1x32xf32>
    %172 = arith.mulf %167, %171 : vector<1x32xf32>
    %c4 = arith.constant 4 : index
    %c0_48 = arith.constant 0 : index
    %173 = vector.load %arg10[%c4, %c0_48] : memref<8x128xf32, #tpu.memory_space<vmem>>, vector<1x128xf32>
    %cst_49 = arith.constant dense<0.000000e+00> : vector<1x128xf32>
    %174 = tpu.matmul %152, %2, %cst_49 {dimension_numbers = #tpu.dot_dimension_numbers<[1], [0], [0], [1], [0, 0, 1, 1], [], []>} : vector<1x32xf32>, vector<32x128xf32>, vector<1x128xf32> -> vector<1x128xf32>
    %175 = arith.addf %173, %174 : vector<1x128xf32>
    %176 = vector.extract_strided_slice %175 {offsets = [0, 0], sizes = [1, 96], strides = [1, 1]} : vector<1x128xf32> to vector<1x96xf32>
    %177 = arith.negf %176 : vector<1x96xf32>
    %178 = math.exp %177 : vector<1x96xf32>
    %cst_50 = arith.constant 1.000000e+00 : f32
    %179 = vector.broadcast %cst_50 : f32 to vector<1x96xf32>
    %180 = arith.addf %179, %178 : vector<1x96xf32>
    %181 = arith.divf %179, %180 : vector<1x96xf32>
    %182 = vector.extract_strided_slice %175 {offsets = [0, 96], sizes = [1, 32], strides = [1, 1]} : vector<1x128xf32> to vector<1x32xf32>
    %183 = math.tanh %182 : vector<1x32xf32>
    %184 = vector.extract_strided_slice %181 {offsets = [0, 0], sizes = [1, 32], strides = [1, 1]} : vector<1x96xf32> to vector<1x32xf32>
    %185 = vector.extract_strided_slice %181 {offsets = [0, 32], sizes = [1, 32], strides = [1, 1]} : vector<1x96xf32> to vector<1x32xf32>
    %186 = vector.extract_strided_slice %181 {offsets = [0, 64], sizes = [1, 32], strides = [1, 1]} : vector<1x96xf32> to vector<1x32xf32>
    %187 = arith.mulf %185, %150 : vector<1x32xf32>
    %188 = arith.mulf %184, %183 : vector<1x32xf32>
    %189 = arith.addf %187, %188 : vector<1x32xf32>
    %190 = math.tanh %189 : vector<1x32xf32>
    %191 = arith.mulf %186, %190 : vector<1x32xf32>
    %cst_51 = arith.constant dense<0.000000e+00> : vector<1x128xf32>
    %192 = tpu.matmul %191, %1, %cst_51 {dimension_numbers = #tpu.dot_dimension_numbers<[1], [0], [0], [1], [0, 0, 1, 1], [], []>} : vector<1x32xf32>, vector<32x128xf32>, vector<1x128xf32> -> vector<1x128xf32>
    %193 = arith.addf %5, %192 : vector<1x128xf32>
    %cst_52 = arith.constant dense<0.000000e+00> : vector<1x128xf32>
    %194 = tpu.matmul %172, %3, %cst_52 {dimension_numbers = #tpu.dot_dimension_numbers<[1], [0], [0], [1], [0, 0, 1, 1], [], []>} : vector<1x32xf32>, vector<32x128xf32>, vector<1x128xf32> -> vector<1x128xf32>
    %195 = arith.addf %193, %194 : vector<1x128xf32>
    %196 = vector.extract_strided_slice %195 {offsets = [0, 0], sizes = [1, 96], strides = [1, 1]} : vector<1x128xf32> to vector<1x96xf32>
    %197 = arith.negf %196 : vector<1x96xf32>
    %198 = math.exp %197 : vector<1x96xf32>
    %cst_53 = arith.constant 1.000000e+00 : f32
    %199 = vector.broadcast %cst_53 : f32 to vector<1x96xf32>
    %200 = arith.addf %199, %198 : vector<1x96xf32>
    %201 = arith.divf %199, %200 : vector<1x96xf32>
    %202 = vector.extract_strided_slice %195 {offsets = [0, 96], sizes = [1, 32], strides = [1, 1]} : vector<1x128xf32> to vector<1x32xf32>
    %203 = math.tanh %202 : vector<1x32xf32>
    %204 = vector.extract_strided_slice %201 {offsets = [0, 0], sizes = [1, 32], strides = [1, 1]} : vector<1x96xf32> to vector<1x32xf32>
    %205 = vector.extract_strided_slice %201 {offsets = [0, 32], sizes = [1, 32], strides = [1, 1]} : vector<1x96xf32> to vector<1x32xf32>
    %206 = vector.extract_strided_slice %201 {offsets = [0, 64], sizes = [1, 32], strides = [1, 1]} : vector<1x96xf32> to vector<1x32xf32>
    %207 = arith.mulf %205, %170 : vector<1x32xf32>
    %208 = arith.mulf %204, %203 : vector<1x32xf32>
    %209 = arith.addf %207, %208 : vector<1x32xf32>
    %210 = math.tanh %209 : vector<1x32xf32>
    %211 = arith.mulf %206, %210 : vector<1x32xf32>
    %c5 = arith.constant 5 : index
    %c0_54 = arith.constant 0 : index
    %212 = vector.load %arg10[%c5, %c0_54] : memref<8x128xf32, #tpu.memory_space<vmem>>, vector<1x128xf32>
    %cst_55 = arith.constant dense<0.000000e+00> : vector<1x128xf32>
    %213 = tpu.matmul %191, %2, %cst_55 {dimension_numbers = #tpu.dot_dimension_numbers<[1], [0], [0], [1], [0, 0, 1, 1], [], []>} : vector<1x32xf32>, vector<32x128xf32>, vector<1x128xf32> -> vector<1x128xf32>
    %214 = arith.addf %212, %213 : vector<1x128xf32>
    %215 = vector.extract_strided_slice %214 {offsets = [0, 0], sizes = [1, 96], strides = [1, 1]} : vector<1x128xf32> to vector<1x96xf32>
    %216 = arith.negf %215 : vector<1x96xf32>
    %217 = math.exp %216 : vector<1x96xf32>
    %cst_56 = arith.constant 1.000000e+00 : f32
    %218 = vector.broadcast %cst_56 : f32 to vector<1x96xf32>
    %219 = arith.addf %218, %217 : vector<1x96xf32>
    %220 = arith.divf %218, %219 : vector<1x96xf32>
    %221 = vector.extract_strided_slice %214 {offsets = [0, 96], sizes = [1, 32], strides = [1, 1]} : vector<1x128xf32> to vector<1x32xf32>
    %222 = math.tanh %221 : vector<1x32xf32>
    %223 = vector.extract_strided_slice %220 {offsets = [0, 0], sizes = [1, 32], strides = [1, 1]} : vector<1x96xf32> to vector<1x32xf32>
    %224 = vector.extract_strided_slice %220 {offsets = [0, 32], sizes = [1, 32], strides = [1, 1]} : vector<1x96xf32> to vector<1x32xf32>
    %225 = vector.extract_strided_slice %220 {offsets = [0, 64], sizes = [1, 32], strides = [1, 1]} : vector<1x96xf32> to vector<1x32xf32>
    %226 = arith.mulf %224, %189 : vector<1x32xf32>
    %227 = arith.mulf %223, %222 : vector<1x32xf32>
    %228 = arith.addf %226, %227 : vector<1x32xf32>
    %229 = math.tanh %228 : vector<1x32xf32>
    %230 = arith.mulf %225, %229 : vector<1x32xf32>
    %cst_57 = arith.constant dense<0.000000e+00> : vector<1x128xf32>
    %231 = tpu.matmul %230, %1, %cst_57 {dimension_numbers = #tpu.dot_dimension_numbers<[1], [0], [0], [1], [0, 0, 1, 1], [], []>} : vector<1x32xf32>, vector<32x128xf32>, vector<1x128xf32> -> vector<1x128xf32>
    %232 = arith.addf %5, %231 : vector<1x128xf32>
    %cst_58 = arith.constant dense<0.000000e+00> : vector<1x128xf32>
    %233 = tpu.matmul %211, %3, %cst_58 {dimension_numbers = #tpu.dot_dimension_numbers<[1], [0], [0], [1], [0, 0, 1, 1], [], []>} : vector<1x32xf32>, vector<32x128xf32>, vector<1x128xf32> -> vector<1x128xf32>
    %234 = arith.addf %232, %233 : vector<1x128xf32>
    %235 = vector.extract_strided_slice %234 {offsets = [0, 0], sizes = [1, 96], strides = [1, 1]} : vector<1x128xf32> to vector<1x96xf32>
    %236 = arith.negf %235 : vector<1x96xf32>
    %237 = math.exp %236 : vector<1x96xf32>
    %cst_59 = arith.constant 1.000000e+00 : f32
    %238 = vector.broadcast %cst_59 : f32 to vector<1x96xf32>
    %239 = arith.addf %238, %237 : vector<1x96xf32>
    %240 = arith.divf %238, %239 : vector<1x96xf32>
    %241 = vector.extract_strided_slice %234 {offsets = [0, 96], sizes = [1, 32], strides = [1, 1]} : vector<1x128xf32> to vector<1x32xf32>
    %242 = math.tanh %241 : vector<1x32xf32>
    %243 = vector.extract_strided_slice %240 {offsets = [0, 0], sizes = [1, 32], strides = [1, 1]} : vector<1x96xf32> to vector<1x32xf32>
    %244 = vector.extract_strided_slice %240 {offsets = [0, 32], sizes = [1, 32], strides = [1, 1]} : vector<1x96xf32> to vector<1x32xf32>
    %245 = vector.extract_strided_slice %240 {offsets = [0, 64], sizes = [1, 32], strides = [1, 1]} : vector<1x96xf32> to vector<1x32xf32>
    %246 = arith.mulf %244, %209 : vector<1x32xf32>
    %247 = arith.mulf %243, %242 : vector<1x32xf32>
    %248 = arith.addf %246, %247 : vector<1x32xf32>
    %249 = math.tanh %248 : vector<1x32xf32>
    %250 = arith.mulf %245, %249 : vector<1x32xf32>
    %c6 = arith.constant 6 : index
    %c0_60 = arith.constant 0 : index
    %251 = vector.load %arg10[%c6, %c0_60] : memref<8x128xf32, #tpu.memory_space<vmem>>, vector<1x128xf32>
    %cst_61 = arith.constant dense<0.000000e+00> : vector<1x128xf32>
    %252 = tpu.matmul %230, %2, %cst_61 {dimension_numbers = #tpu.dot_dimension_numbers<[1], [0], [0], [1], [0, 0, 1, 1], [], []>} : vector<1x32xf32>, vector<32x128xf32>, vector<1x128xf32> -> vector<1x128xf32>
    %253 = arith.addf %251, %252 : vector<1x128xf32>
    %254 = vector.extract_strided_slice %253 {offsets = [0, 0], sizes = [1, 96], strides = [1, 1]} : vector<1x128xf32> to vector<1x96xf32>
    %255 = arith.negf %254 : vector<1x96xf32>
    %256 = math.exp %255 : vector<1x96xf32>
    %cst_62 = arith.constant 1.000000e+00 : f32
    %257 = vector.broadcast %cst_62 : f32 to vector<1x96xf32>
    %258 = arith.addf %257, %256 : vector<1x96xf32>
    %259 = arith.divf %257, %258 : vector<1x96xf32>
    %260 = vector.extract_strided_slice %253 {offsets = [0, 96], sizes = [1, 32], strides = [1, 1]} : vector<1x128xf32> to vector<1x32xf32>
    %261 = math.tanh %260 : vector<1x32xf32>
    %262 = vector.extract_strided_slice %259 {offsets = [0, 0], sizes = [1, 32], strides = [1, 1]} : vector<1x96xf32> to vector<1x32xf32>
    %263 = vector.extract_strided_slice %259 {offsets = [0, 32], sizes = [1, 32], strides = [1, 1]} : vector<1x96xf32> to vector<1x32xf32>
    %264 = vector.extract_strided_slice %259 {offsets = [0, 64], sizes = [1, 32], strides = [1, 1]} : vector<1x96xf32> to vector<1x32xf32>
    %265 = arith.mulf %263, %228 : vector<1x32xf32>
    %266 = arith.mulf %262, %261 : vector<1x32xf32>
    %267 = arith.addf %265, %266 : vector<1x32xf32>
    %268 = math.tanh %267 : vector<1x32xf32>
    %269 = arith.mulf %264, %268 : vector<1x32xf32>
    %cst_63 = arith.constant dense<0.000000e+00> : vector<1x128xf32>
    %270 = tpu.matmul %269, %1, %cst_63 {dimension_numbers = #tpu.dot_dimension_numbers<[1], [0], [0], [1], [0, 0, 1, 1], [], []>} : vector<1x32xf32>, vector<32x128xf32>, vector<1x128xf32> -> vector<1x128xf32>
    %271 = arith.addf %5, %270 : vector<1x128xf32>
    %cst_64 = arith.constant dense<0.000000e+00> : vector<1x128xf32>
    %272 = tpu.matmul %250, %3, %cst_64 {dimension_numbers = #tpu.dot_dimension_numbers<[1], [0], [0], [1], [0, 0, 1, 1], [], []>} : vector<1x32xf32>, vector<32x128xf32>, vector<1x128xf32> -> vector<1x128xf32>
    %273 = arith.addf %271, %272 : vector<1x128xf32>
    %274 = vector.extract_strided_slice %273 {offsets = [0, 0], sizes = [1, 96], strides = [1, 1]} : vector<1x128xf32> to vector<1x96xf32>
    %275 = arith.negf %274 : vector<1x96xf32>
    %276 = math.exp %275 : vector<1x96xf32>
    %cst_65 = arith.constant 1.000000e+00 : f32
    %277 = vector.broadcast %cst_65 : f32 to vector<1x96xf32>
    %278 = arith.addf %277, %276 : vector<1x96xf32>
    %279 = arith.divf %277, %278 : vector<1x96xf32>
    %280 = vector.extract_strided_slice %273 {offsets = [0, 96], sizes = [1, 32], strides = [1, 1]} : vector<1x128xf32> to vector<1x32xf32>
    %281 = math.tanh %280 : vector<1x32xf32>
    %282 = vector.extract_strided_slice %279 {offsets = [0, 0], sizes = [1, 32], strides = [1, 1]} : vector<1x96xf32> to vector<1x32xf32>
    %283 = vector.extract_strided_slice %279 {offsets = [0, 32], sizes = [1, 32], strides = [1, 1]} : vector<1x96xf32> to vector<1x32xf32>
    %284 = vector.extract_strided_slice %279 {offsets = [0, 64], sizes = [1, 32], strides = [1, 1]} : vector<1x96xf32> to vector<1x32xf32>
    %285 = arith.mulf %283, %248 : vector<1x32xf32>
    %286 = arith.mulf %282, %281 : vector<1x32xf32>
    %287 = arith.addf %285, %286 : vector<1x32xf32>
    %288 = math.tanh %287 : vector<1x32xf32>
    %289 = arith.mulf %284, %288 : vector<1x32xf32>
    %c7 = arith.constant 7 : index
    %c0_66 = arith.constant 0 : index
    %290 = vector.load %arg10[%c7, %c0_66] : memref<8x128xf32, #tpu.memory_space<vmem>>, vector<1x128xf32>
    %cst_67 = arith.constant dense<0.000000e+00> : vector<1x128xf32>
    %291 = tpu.matmul %269, %2, %cst_67 {dimension_numbers = #tpu.dot_dimension_numbers<[1], [0], [0], [1], [0, 0, 1, 1], [], []>} : vector<1x32xf32>, vector<32x128xf32>, vector<1x128xf32> -> vector<1x128xf32>
    %292 = arith.addf %290, %291 : vector<1x128xf32>
    %293 = vector.extract_strided_slice %292 {offsets = [0, 0], sizes = [1, 96], strides = [1, 1]} : vector<1x128xf32> to vector<1x96xf32>
    %294 = arith.negf %293 : vector<1x96xf32>
    %295 = math.exp %294 : vector<1x96xf32>
    %cst_68 = arith.constant 1.000000e+00 : f32
    %296 = vector.broadcast %cst_68 : f32 to vector<1x96xf32>
    %297 = arith.addf %296, %295 : vector<1x96xf32>
    %298 = arith.divf %296, %297 : vector<1x96xf32>
    %299 = vector.extract_strided_slice %292 {offsets = [0, 96], sizes = [1, 32], strides = [1, 1]} : vector<1x128xf32> to vector<1x32xf32>
    %300 = math.tanh %299 : vector<1x32xf32>
    %301 = vector.extract_strided_slice %298 {offsets = [0, 0], sizes = [1, 32], strides = [1, 1]} : vector<1x96xf32> to vector<1x32xf32>
    %302 = vector.extract_strided_slice %298 {offsets = [0, 32], sizes = [1, 32], strides = [1, 1]} : vector<1x96xf32> to vector<1x32xf32>
    %303 = vector.extract_strided_slice %298 {offsets = [0, 64], sizes = [1, 32], strides = [1, 1]} : vector<1x96xf32> to vector<1x32xf32>
    %304 = arith.mulf %302, %267 : vector<1x32xf32>
    %305 = arith.mulf %301, %300 : vector<1x32xf32>
    %306 = arith.addf %304, %305 : vector<1x32xf32>
    %307 = math.tanh %306 : vector<1x32xf32>
    %308 = arith.mulf %303, %307 : vector<1x32xf32>
    %cst_69 = arith.constant dense<0.000000e+00> : vector<1x128xf32>
    %309 = tpu.matmul %308, %1, %cst_69 {dimension_numbers = #tpu.dot_dimension_numbers<[1], [0], [0], [1], [0, 0, 1, 1], [], []>} : vector<1x32xf32>, vector<32x128xf32>, vector<1x128xf32> -> vector<1x128xf32>
    %310 = arith.addf %5, %309 : vector<1x128xf32>
    %cst_70 = arith.constant dense<0.000000e+00> : vector<1x128xf32>
    %311 = tpu.matmul %289, %3, %cst_70 {dimension_numbers = #tpu.dot_dimension_numbers<[1], [0], [0], [1], [0, 0, 1, 1], [], []>} : vector<1x32xf32>, vector<32x128xf32>, vector<1x128xf32> -> vector<1x128xf32>
    %312 = arith.addf %310, %311 : vector<1x128xf32>
    %313 = vector.extract_strided_slice %312 {offsets = [0, 0], sizes = [1, 96], strides = [1, 1]} : vector<1x128xf32> to vector<1x96xf32>
    %314 = arith.negf %313 : vector<1x96xf32>
    %315 = math.exp %314 : vector<1x96xf32>
    %cst_71 = arith.constant 1.000000e+00 : f32
    %316 = vector.broadcast %cst_71 : f32 to vector<1x96xf32>
    %317 = arith.addf %316, %315 : vector<1x96xf32>
    %318 = arith.divf %316, %317 : vector<1x96xf32>
    %319 = vector.extract_strided_slice %312 {offsets = [0, 96], sizes = [1, 32], strides = [1, 1]} : vector<1x128xf32> to vector<1x32xf32>
    %320 = math.tanh %319 : vector<1x32xf32>
    %321 = vector.extract_strided_slice %318 {offsets = [0, 0], sizes = [1, 32], strides = [1, 1]} : vector<1x96xf32> to vector<1x32xf32>
    %322 = vector.extract_strided_slice %318 {offsets = [0, 32], sizes = [1, 32], strides = [1, 1]} : vector<1x96xf32> to vector<1x32xf32>
    %323 = vector.extract_strided_slice %318 {offsets = [0, 64], sizes = [1, 32], strides = [1, 1]} : vector<1x96xf32> to vector<1x32xf32>
    %324 = arith.mulf %322, %287 : vector<1x32xf32>
    %325 = arith.mulf %321, %320 : vector<1x32xf32>
    %326 = arith.addf %324, %325 : vector<1x32xf32>
    %327 = math.tanh %326 : vector<1x32xf32>
    %328 = arith.mulf %323, %327 : vector<1x32xf32>
    %cst_72 = arith.constant dense<0.000000e+00> : vector<1x128xf32>
    %329 = tpu.matmul %328, %6, %cst_72 {dimension_numbers = #tpu.dot_dimension_numbers<[1], [0], [0], [1], [0, 0, 1, 1], [], []>} : vector<1x32xf32>, vector<32x128xf32>, vector<1x128xf32> -> vector<1x128xf32>
    %330 = arith.addf %329, %7 : vector<1x128xf32>
    %c0_73 = arith.constant 0 : index
    %c0_74 = arith.constant 0 : index
    %331 = vector.load %arg9[%c0_73, %c0_74] : memref<1x128xf32, #tpu.memory_space<vmem>>, vector<1x128xf32>
    tpu.vector_store %arg9[%c0_73, %c0_74], %330 {strides = array<i32>} : memref<1x128xf32, #tpu.memory_space<vmem>>, vector<1x128xf32>,
    return
  }
}

</mosaic_0001>

<bundles_post_ra>
// kernel: audio_lstm_forward.1
= control target key start
LH: loop header
LB: loop body
LE: loop exit
PB: predicated region body
PF: predicated region fallthrough
CT: control target
= control target key end

     0   :  { %14 = vsyncpa [#allocation4], 0  ;;  %s3947_s0 = inlined_call_operand.hbm [shape: f32[8,16], index: 0, kind: input, shape index: {}]   ;;  %s3948_s1 = inlined_call_operand.hbm [shape: f32[16,128], index: 1, kind: input, shape index: {}]   ;;  %s3949_s2 = inlined_call_operand.hbm [shape: f32[32,128], index: 2, kind: input, shape index: {}]   ;;  %s3950_s3 = inlined_call_operand.vmem [shape: f32[1,128], index: 3, kind: input, shape index: {}]   ;;  %s3951_s4 = inlined_call_operand.hbm [shape: f32[32,128], index: 4, kind: input, shape index: {}]   ;;  %s3952_s5 = inlined_call_operand.hbm [shape: f32[32,128], index: 5, kind: input, shape index: {}]   ;;  %s3953_s6 = inlined_call_operand.vmem [shape: f32[1,128], index: 6, kind: input, shape index: {}]   ;;  %s3954_s7 = inlined_call_operand.hbm [shape: f32[32,128], index: 7, kind: input, shape index: {}]   ;;  %s3955_s8 = inlined_call_operand.vmem [shape: f32[1,128], index: 8, kind: input, shape index: {}]   ;;  %s3956_s9 = inlined_call_operand.hbm [shape: f32[1,128], index: 9, kind: output, shape index: {}]  }
   0x1   :  { %15 = vsyncpa [#allocation7], 0 }
   0x2   :  { %16 = vsyncpa [#allocation10], 0 }
   0x3   :  { %17 = vsyncpa [#allocation13], 0 }
   0x4   :  { %18 = vsyncpa [#allocation5], 0  ;;  %s3451_s30 = smov [#allocation6]   ;;  %s3287_s13 = scalar_lea.hbm %s3948_s1, 256 }
   0x5   :  { %s34_s10 = sshll.u32 %s3451_s30, 4  ;;  %p3288_p0 = scmp.ne.s32.totalorder %s3948_s1, %s3287_s13  ;;  %s35_s10 = int_to_ptr.vmem [resolvable:$true] %s34_s10 }
   0x6   :  { %p3291_p1 = scmp.lt.u32.totalorder %s3287_s13, %s3948_s1 }
   0x8   :  { %p3293_p2 = pnand %p3291_p1, %p3288_p0 }
   0xa   :  { %3296 = shalt.err (!%p3293_p2)
}
   0xb   :  { %s3297_s18 = scalar_lea.vmem %s35_s10, 256  ;;  %p3302_p4 = scmp.lt.s32.totalorder %s35_s10, %s35_s10 }
   0xc   :  { %p3298_p3 = scmp.ne.s32.totalorder %s35_s10, %s3297_s18  ;;  %p3303_p5 = scmp.lt.s32.totalorder %s3297_s18, %s3297_s18 }
   0xe   :  { %p3304_p6 = por %p3303_p5, %p3302_p4 }
  0x10   :  { %p3305_p7 = pnand %p3304_p6, %p3298_p3 }
  0x12   :  { %3308 = shalt.err (!%p3305_p7)
}
  0x13   :  { %s3452_s19 = smov 128   ;;  %s3453_s20 = smov 8  }
  0x14   :  { %40 = dma.hbm_to_vmem [thread:$0]  %s3948_s1, 256, %s35_s10, [#allocation7], %s3452_s19, %s3452_s19, %s3453_s20  }
  0x15   :  { %s3454_s23 = smov [#allocation9]   ;;  %s3455_s25 = smov [#allocation3]  }
  0x16   :  { %s60_s24 = sshll.u32 %s3454_s23, 4  ;;  %s25_s26 = sshll.u32 %s3455_s25, 4  ;;  %s61_s24 = int_to_ptr.vmem [resolvable:$true] %s60_s24  ;;  %s26_s26 = int_to_ptr.vmem [resolvable:$true] %s25_s26 }
  0x17   :  { %s3309_s29 = scalar_lea.hbm %s3951_s4, 512 }
  0x18   :  { %p3310_p8 = scmp.ne.s32.totalorder %s3951_s4, %s3309_s29  ;;  %p3313_p9 = scmp.lt.u32.totalorder %s3309_s29, %s3951_s4 }
  0x1a   :  { %p3315_p10 = pnand %p3313_p9, %p3310_p8 }
  0x1c   :  { %3318 = shalt.err (!%p3315_p10)
}
  0x1d   :  { %s3319_s1 = scalar_lea.vmem %s61_s24, 512  ;;  %p3324_p12 = scmp.lt.s32.totalorder %s61_s24, %s61_s24 }
  0x1e   :  { %p3320_p11 = scmp.ne.s32.totalorder %s61_s24, %s3319_s1  ;;  %p3325_p13 = scmp.lt.s32.totalorder %s3319_s1, %s3319_s1 }
  0x20   :  { %p3326_p0 = por %p3325_p13, %p3324_p12 }
  0x22   :  { %p3327_p1 = pnand %p3326_p0, %p3320_p11 }
  0x24   :  { %3330 = shalt.err (!%p3327_p1)
}
  0x25   :  { %66 = dma.hbm_to_vmem [thread:$0]  %s3951_s4, 512, %s61_s24, [#allocation10], %s3452_s19, %s3452_s19, %s3453_s20  }
  0x26   :  { %s3331_s17 = scalar_lea.hbm %s3947_s0, 128 }
  0x27   :  { %p3332_p2 = scmp.ne.s32.totalorder %s3947_s0, %s3331_s17  ;;  %p3335_p3 = scmp.lt.u32.totalorder %s3331_s17, %s3947_s0 }
  0x29   :  { %p3337_p4 = pnand %p3335_p3, %p3332_p2 }
  0x2b   :  { %3340 = shalt.err (!%p3337_p4)
}
  0x2c   :  { %s3341_s25 = scalar_lea.vmem %s26_s26, 128  ;;  %p3346_p6 = scmp.lt.s32.totalorder %s26_s26, %s26_s26 }
  0x2d   :  { %p3342_p5 = scmp.ne.s32.totalorder %s26_s26, %s3341_s25  ;;  %p3347_p7 = scmp.lt.s32.totalorder %s3341_s25, %s3341_s25 }
  0x2f   :  { %p3348_p8 = por %p3347_p7, %p3346_p6 }
  0x31   :  { %p3349_p9 = pnand %p3348_p8, %p3342_p5 }
  0x33   :  { %3352 = shalt.err (!%p3349_p9)
}
  0x34   :  { %28 = dma.hbm_to_vmem [thread:$0]  %s3947_s0, 128, %s26_s26, [#allocation4]  }
  0x35   :  { %s3456_s27 = smov [#allocation8]   ;;  %s3457_s29 = smov [#allocation11]  }
  0x36   :  { %s46_s28 = sshll.u32 %s3456_s27, 4  ;;  %s72_s30 = sshll.u32 %s3457_s29, 4  ;;  %s47_s28 = int_to_ptr.vmem [resolvable:$true] %s46_s28  ;;  %s73_s30 = int_to_ptr.vmem [resolvable:$true] %s72_s30 }
  0x37   :  { %s3353_s13 = scalar_lea.hbm %s3949_s2, 512 }
  0x38   :  { %p3354_p10 = scmp.ne.s32.totalorder %s3949_s2, %s3353_s13  ;;  %p3357_p11 = scmp.lt.u32.totalorder %s3353_s13, %s3949_s2 }
  0x3a   :  { %p3359_p12 = pnand %p3357_p11, %p3354_p10 }
  0x3c   :  { %3362 = shalt.err (!%p3359_p12)
}
  0x3d   :  { %s3363_s0 = scalar_lea.vmem %s47_s28, 512  ;;  %p3368_p0 = scmp.lt.s32.totalorder %s47_s28, %s47_s28 }
  0x3e   :  { %p3364_p13 = scmp.ne.s32.totalorder %s47_s28, %s3363_s0  ;;  %p3369_p1 = scmp.lt.s32.totalorder %s3363_s0, %s3363_s0 }
  0x40   :  { %p3370_p2 = por %p3369_p1, %p3368_p0 }
  0x42   :  { %p3371_p3 = pnand %p3370_p2, %p3364_p13 }
  0x44   :  { %3374 = shalt.err (!%p3371_p3)
}
  0x45   :  { %52 = dma.hbm_to_vmem [thread:$0]  %s3949_s2, 512, %s47_s28, [#allocation7], %s3452_s19, %s3452_s19, %s3453_s20  }
  0x46   :  { %s3375_s21 = scalar_lea.hbm %s3952_s5, 512 }
  0x47   :  { %p3376_p4 = scmp.ne.s32.totalorder %s3952_s5, %s3375_s21  ;;  %p3379_p5 = scmp.lt.u32.totalorder %s3375_s21, %s3952_s5 }
  0x49   :  { %p3381_p6 = pnand %p3379_p5, %p3376_p4 }
  0x4b   :  { %3384 = shalt.err (!%p3381_p6)
}
  0x4c   :  { %s3385_s24 = scalar_lea.vmem %s73_s30, 512  ;;  %p3390_p8 = scmp.lt.s32.totalorder %s73_s30, %s73_s30 }
  0x4d   :  { %p3386_p7 = scmp.ne.s32.totalorder %s73_s30, %s3385_s24  ;;  %p3391_p9 = scmp.lt.s32.totalorder %s3385_s24, %s3385_s24 }
  0x4f   :  { %p3392_p10 = por %p3391_p9, %p3390_p8 }
  0x51   :  { %p3393_p11 = pnand %p3392_p10, %p3386_p7 }
  0x53   :  { %3396 = shalt.err (!%p3393_p11)
}
  0x54   :  { %78 = dma.hbm_to_vmem [thread:$0]  %s3952_s5, 512, %s73_s30, [#allocation10], %s3452_s19, %s3452_s19, %s3453_s20  }
  0x55   :  { %s3458_s28 = smov [#allocation12]   ;;  %s3397_s13 = scalar_lea.hbm %s3954_s7, 512 }
  0x56   :  { %s86_s29 = sshll.u32 %s3458_s28, 4  ;;  %p3398_p12 = scmp.ne.s32.totalorder %s3954_s7, %s3397_s13  ;;  %s87_s29 = int_to_ptr.vmem [resolvable:$true] %s86_s29 }
  0x57   :  { %p3401_p13 = scmp.lt.u32.totalorder %s3397_s13, %s3954_s7 }
  0x59   :  { %p3403_p0 = pnand %p3401_p13, %p3398_p12 }
  0x5b   :  { %3406 = shalt.err (!%p3403_p0)
}
  0x5c   :  { %s3407_s0 = scalar_lea.vmem %s87_s29, 512  ;;  %p3412_p2 = scmp.lt.s32.totalorder %s87_s29, %s87_s29 }
  0x5d   :  { %p3408_p1 = scmp.ne.s32.totalorder %s87_s29, %s3407_s0  ;;  %p3413_p3 = scmp.lt.s32.totalorder %s3407_s0, %s3407_s0 }
  0x5f   :  { %p3414_p4 = por %p3413_p3, %p3412_p2 }
  0x61   :  { %p3415_p5 = pnand %p3414_p4, %p3408_p1 }
  0x63   :  { %3418 = shalt.err (!%p3415_p5)
}
  0x64   :  { %92 = dma.hbm_to_vmem [thread:$0]  %s3954_s7, 512, %s87_s29, [#allocation13], %s3452_s19, %s3452_s19, %s3453_s20  }
  0x65   :  { %3441 = dma.done.wait [#allocation4], 128  }
  0x66   :  { %3442 = vsyncadd [#allocation4], 4294967168 }
  0x67   :  { %3443 = dma.done.wait [#allocation7], 768  }
  0x68   :  { %3444 = vsyncadd [#allocation7], 4294966528 }
  0x69   :  { %3445 = dma.done.wait [#allocation10], 1024  }
  0x6a   :  { %3446 = vsyncadd [#allocation10], 4294966272 }
  0x6b   :  { %3447 = dma.done.wait [#allocation13], 512  }
  0x6c   :  { %3448 = vsyncadd [#allocation13], 4294966784  ;;  %v3459_v0 = vmov 0.0|0.0   ;;  %vm3460_vm0 = vmmov 0   ;;  %v3461_v1 = vmov 0.0   ;;  %v113_v2 = vld [vmem:[#allocation6] sm:$0xff] }
  0x6d   :  { %2968 = vmatprep.subr.bf16.mxu0 %v3459_v0  ;;  %2690 = vmatprep.mubr.msk.f32.mxu0 %vm3460_vm0, %v3461_v1  ;;  %v114_v3 = vld [vmem:[#allocation6 + $0x8] sm:$0xff]  ;;  %v119_v5 = vld [vmem:[#allocation8] sm:$0xff]  ;;  %v120_v6 = vld [vmem:[#allocation8 + $0x8] sm:$0xff]  ;;  %vm141_vm1 = vcmask 130048   ;;  %s3462_s20 = smov 32   ;;  %vm217_vm2 = vcmask 261120  }
  0x6e   :  { %2971 = vmatprep.subr.bf16.mxu1 %v3459_v0  ;;  %2701 = vmatprep.mubr.msk.f32.mxu1 %vm3460_vm0, %v3461_v1  ;;  %v2969_v4 = vpack.c.bf16 %v114_v3, %v113_v2  ;;  %v121_v7 = vld [vmem:[#allocation8 + $0x10] sm:$0xff]  ;;  %v3608_v8 = vpack.c.bf16 %v120_v6, %v119_v5  ;;  %v122_v9 = vld [vmem:[#allocation8 + $0x18] sm:$0xff]  ;;  %v134_v10 = vld [vmem:[#allocation3] sm:$0xff]  ;;  %s3464_s18 = smov [#allocation14]  }
  0x6f   :  { %v3611_v11 = vpack.c.bf16 %v122_v9, %v121_v7  ;;  %v2517_v12 = vld [vmem:[%s3950_s3] ss:$0 sm:$0xff]  ;;  %v116_v31 = vld [vmem:[#allocation9 + $0x8] sm:$0xff]  ;;  %v117_v32 = vld [vmem:[#allocation9 + $0x10] sm:$0xff]  ;;  %s3463_s3 = smov 64   ;;  %s2505_s21 = sshll.u32 %s3464_s18, 4  ;;  %s2506_s21 = int_to_ptr.vmem [resolvable:$true] %s2505_s21 }
  0x70   :  { %2970 = vmatpush3.bf16.msra.mxu0 %v2969_v4  ;;  %2973 = vmatpush3.bf16.msra.mxu1 %v3608_v8  ;;  %v115_v30 = vld [vmem:[#allocation9] sm:$0xff]  ;;  %v118_v34 = vld [vmem:[#allocation9 + $0x18] sm:$0xff]  ;;  %v124_v40 = vld [vmem:[#allocation11 + $0x8] sm:$0xff]  ;;  %s3419_s22 = scalar_lea.vmem %s2506_s21, 16  ;;  %s3423_s23 = scalar_lea.vmem %s2506_s21, 32 }
  0x71   :  { %2977 = vmatprep.subr.bf16.mxu0 %v3459_v0  ;;  %2974 = vmatprep.subr.bf16.mxu1 %v3459_v0  ;;  %v3634_v33 = vpack.c.bf16 %v116_v31, %v115_v30  ;;  %v3637_v35 = vpack.c.bf16 %v118_v34, %v117_v32  ;;  %v123_v39 = vld [vmem:[#allocation11] sm:$0xff]  ;;  %v125_v42 = vld [vmem:[#allocation11 + $0x10] sm:$0xff]  ;;  %v126_v43 = vld [vmem:[#allocation11 + $0x18] sm:$0xff]  ;;  %p3420_p6 = scmp.ne.s32.totalorder %s2506_s21, %s3419_s22  ;;  %p3424_p7 = scmp.lt.s32.totalorder %s2506_s21, %s2506_s21 }
  0x72   :  { %v3644_v41 = vpack.c.bf16 %v124_v40, %v123_v39  ;;  %v3649_v45 = vpack.c.bf16 %v126_v43, %v125_v42  ;;  %v3672_v50 = vld [vmem:[%s3953_s6] sm:$0x1]  ;;  %p3425_p8 = scmp.lt.s32.totalorder %s3423_s23, %s3419_s22 }
  0x73   :  { %2691 = vmatmul.mubr.msk.f32.vlgmr.msra.gmra.mrb[0].mxu0 %vm141_vm1, %v134_v10 }
  0x74   :  { %2712 = vmatprep.mubr.msk.f32.mxu0 %vm3460_vm0, %v3461_v1  ;;  %2976 = vmatpush3.bf16.msra.mxu1 %v3611_v11  ;;  %p3426_p9 = por %p3425_p8, %p3424_p7 }
  0x75   :  { %2989 = vmatprep.subr.bf16.mxu1 %v3459_v0  ;;  %2979 = vmatpush3.bf16.msra.mxu0 %v3634_v33 }
  0x76   :  { %2980 = vmatprep.subr.bf16.mxu0 %v3459_v0  ;;  %p3427_p10 = pnand %p3426_p9, %p3420_p6 }
  0x77   :  { %2702 = vmatmul.mubr.f32.vlgmr.msra.gmra.mrb[0].mxu1 %v3461_v1 }
  0x78   :  { %2991 = vmatpush3.bf16.msra.mxu1 %v3608_v8  ;;  %2734 = vmatprep.mubr.msk.f32.mxu1 %vm3460_vm0, %v3461_v1 }
  0x79   :  { %2992 = vmatprep.subr.bf16.mxu1 %v3459_v0  ;;  %2982 = vmatpush3.bf16.msra.mxu0 %v3637_v35 }
  0x7a   :  { %2983 = vmatprep.subr.bf16.mxu0 %v3459_v0 }
  0x7c   :  { %2994 = vmatpush3.bf16.msra.mxu1 %v3611_v11 }
  0x7d   :  { %2995 = vmatprep.subr.bf16.mxu1 %v3459_v0 }
 0x146   :  { %v211_v13 = vpop.f32.mrb[0].mxu0 }
 0x147   :  { %v212_v14 = vadd.f32 %v2517_v12, %v211_v13  ;;  %v2692_v15 = vpop.f32.mrb[1].mxu0 }
 0x149   :  { %215 = vst [vmem:[#allocation2] sm:$0xff] %v212_v14 }
 0x14a   :  { %v287_v16 = vpop.f32.mrb[0].mxu1 }
 0x14b   :  { %v2703_v17 = vpop.f32.mrb[1].mxu1 }
 0x150   :  { %v216_v18 = vld [vmem:[#allocation2] sm:$0x1]  ;;  %v487_v46 = vld [vmem:[#allocation2 + $0x1] sm:$0x1] }
 0x151   :  { %v291_v19 = vadd.f32 %v287_v16, %v216_v18  ;;  %v660_v16 = vlaneseq }
 0x153   :  { %3159 = vtanh.f32 %v291_v19  ;;  %v2519_v21 = vmul.f32 -1.442695, %v291_v19  ;;  %v661_v19 = vshrl.u32 %v660_v16, 7 }
 0x155   :  { %3161 = vpow2.f32 %v2519_v21 }
 0x15d   :  { %v3160_v20 = vpop.eup %3159 }
 0x15e   :  { %301 = vrot.lane.b32.xlu0 %v3160_v20, %s3462_s20  ;;  %v3689_v20 = vsub.s32 0, %v661_v19 }
 0x15f   :  { %v3162_v22 = vpop.eup %3161 }
 0x160   :  { %v295_v23 = vadd.f32 1.0, %v3162_v22 }
 0x162   :  { %3163 = vrcp.f32 %v295_v23 }
 0x16c   :  { %v3164_v24 = vpop.eup %3163 }
 0x16d   :  { %v299_v27 = vmul.f32 0.0, %v3164_v24 }
 0x1d0   :  { %v302_v25 = vpop.permute.xlu0 %301 }
 0x1d1   :  { %v304_v26 = vmul.f32 %v3164_v24, %v302_v25 }
 0x1d3   :  { %306 = vrot.lane.b32.xlu0 %v304_v26, %s3462_s20  ;;  %v763_v26 = vld [vmem:[#allocation2 + $0x2] sm:$0x1] }
 0x245   :  { %v307_v28 = vpop.permute.xlu0 %306 }
 0x246   :  { %v3631_v29 = vadd.f32 %v307_v28, %v299_v27 }
 0x248   :  { %3165 = vtanh.f32 %v3631_v29 }
 0x252   :  { %v3166_v36 = vpop.eup %3165 }
 0x253   :  { %312 = vrot.lane.b32.xlu1 %v3166_v36, %s3462_s20 }
 0x2c5   :  { %v313_v37 = vpop.permute.xlu1 %312 }
 0x2c6   :  { %v315_v38 = vmul.f32 %v3164_v24, %v313_v37 }
 0x2c8   :  { %317 = vrot.lane.b32.xlu1 %v315_v38, %s3463_s3 }
 0x33a   :  { %v318_v44 = vpop.permute.xlu1 %317 }
 0x33b   :  { %2713 = vmatmul.mubr.msk.f32.vlgmr.msra.gmra.mrb[2].mxu0 %vm217_vm2, %v318_v44  ;;  %2735 = vmatmul.mubr.msk.f32.vlgmr.msra.gmra.mrb[2].mxu1 %vm217_vm2, %v318_v44 }
 0x33c   :  { %2985 = vmatpush3.bf16.msra.mxu0 %v3644_v41  ;;  %2723 = vmatprep.mubr.msk.f32.mxu0 %vm3460_vm0, %v3461_v1 }
 0x33d   :  { %2986 = vmatprep.subr.bf16.mxu0 %v3459_v0  ;;  %2997 = vmatpush3.bf16.msra.mxu1 %v3634_v33 }
 0x33e   :  { %2998 = vmatprep.subr.bf16.mxu1 %v3459_v0  ;;  %2745 = vmatprep.mubr.msk.f32.mxu1 %vm3460_vm0, %v3461_v1 }
 0x340   :  { %2988 = vmatpush3.bf16.msra.mxu0 %v3649_v45 }
 0x341   :  { %3007 = vmatprep.subr.bf16.mxu0 %v3459_v0  ;;  %3000 = vmatpush3.bf16.msra.mxu1 %v3637_v35 }
 0x342   :  { %3001 = vmatprep.subr.bf16.mxu1 %v3459_v0 }
 0x343   :  { %2724 = vmatmul.mubr.f32.vlgmr.msra.gmra.mrb[2].mxu0 %v3461_v1 }
 0x344   :  { %3009 = vmatpush3.bf16.msra.mxu0 %v3608_v8  ;;  %2767 = vmatprep.mubr.msk.f32.mxu0 %vm3460_vm0, %v3461_v1 }
 0x345   :  { %3010 = vmatprep.subr.bf16.mxu0 %v3459_v0 }
 0x348   :  { %3012 = vmatpush3.bf16.msra.mxu0 %v3611_v11 }
 0x349   :  { %3013 = vmatprep.subr.bf16.mxu0 %v3459_v0 }
 0x40e   :  { %v554_v47 = vpop.f32.mrb[2].mxu1 }
 0x40f   :  { %v558_v48 = vadd.f32 %v554_v47, %v487_v46  ;;  %v2736_v49 = vpop.f32.mrb[3].mxu1 }
 0x411   :  { %3167 = vtanh.f32 %v558_v48  ;;  %v2523_v56 = vmul.f32 -1.442695, %v558_v48 }
 0x416   :  { %v458_v51 = vpop.f32.mrb[2].mxu0 }
 0x417   :  { %v3121_v52 = vadd.f32 %v458_v51, %v3672_v50  ;;  %v2725_v53 = vpop.f32.mrb[3].mxu0 }
 0x419   :  { %3169 = vtanh.f32 %v3121_v52  ;;  %v2521_v57 = vmul.f32 -1.442695, %v3121_v52 }
 0x41a   :  { %3171 = vpow2.f32 %v2523_v56 }
 0x41b   :  { %v3168_v54 = vpop.eup %3167  ;;  %3173 = vpow2.f32 %v2521_v57 }
 0x41c   :  { %568 = vrot.lane.b32.xlu0 %v3168_v54, %s3462_s20 }
 0x423   :  { %v3170_v55 = vpop.eup %3169 }
 0x424   :  { %472 = vrot.lane.b32.xlu1 %v3170_v55, %s3462_s20  ;;  %v3172_v58 = vpop.eup %3171 }
 0x425   :  { %v562_v59 = vadd.f32 1.0, %v3172_v58  ;;  %v3174_v60 = vpop.eup %3173 }
 0x426   :  { %v466_v61 = vadd.f32 1.0, %v3174_v60 }
 0x427   :  { %3175 = vrcp.f32 %v562_v59 }
 0x428   :  { %3177 = vrcp.f32 %v466_v61 }
 0x431   :  { %v3176_v62 = vpop.eup %3175 }
 0x432   :  { %v3178_v3 = vpop.eup %3177  ;;  %v566_v6 = vmul.f32 %v3176_v62, %v3631_v29 }
 0x433   :  { %v470_v10 = vmul.f32 0.0, %v3178_v3 }
 0x48e   :  { %v569_v63 = vpop.permute.xlu0 %568 }
 0x48f   :  { %v571_v2 = vmul.f32 %v3176_v62, %v569_v63 }
 0x491   :  { %573 = vrot.lane.b32.xlu0 %v571_v2, %s3462_s20 }
 0x496   :  { %v473_v4 = vpop.permute.xlu1 %472 }
 0x497   :  { %v475_v5 = vmul.f32 %v3178_v3, %v473_v4 }
 0x499   :  { %477 = vrot.lane.b32.xlu1 %v475_v5, %s3462_s20  ;;  %v1039_v5 = vld [vmem:[#allocation2 + $0x3] sm:$0x1] }
 0x503   :  { %v574_v7 = vpop.permute.xlu0 %573 }
 0x504   :  { %v3680_v9 = vadd.f32 %v574_v7, %v566_v6 }
 0x506   :  { %3179 = vtanh.f32 %v3680_v9 }
 0x50b   :  { %v478_v12 = vpop.permute.xlu1 %477 }
 0x50c   :  { %v3683_v13 = vadd.f32 %v478_v12, %v470_v10 }
 0x50e   :  { %3181 = vtanh.f32 %v3683_v13 }
 0x510   :  { %v3180_v14 = vpop.eup %3179 }
 0x511   :  { %579 = vrot.lane.b32.xlu0 %v3180_v14, %s3462_s20 }
 0x518   :  { %v3182_v15 = vpop.eup %3181 }
 0x519   :  { %483 = vrot.lane.b32.xlu1 %v3182_v15, %s3462_s20 }
 0x583   :  { %v580_v17 = vpop.permute.xlu0 %579 }
 0x584   :  { %v582_v18 = vmul.f32 %v3176_v62, %v580_v17 }
 0x586   :  { %584 = vrot.lane.b32.xlu0 %v582_v18, %s3463_s3 }
 0x58b   :  { %v484_v21 = vpop.permute.xlu1 %483 }
 0x58c   :  { %v486_v22 = vmul.f32 %v3178_v3, %v484_v21 }
 0x58e   :  { %v663_v23 = vrot.slane %v486_v22, %v3689_v20 }
 0x590   :  { %664 = vrot.lane.b32.xlu1 %v663_v23, %s3463_s3 }
 0x5f8   :  { %v585_v24 = vpop.permute.xlu0 %584 }
 0x5f9   :  { %2746 = vmatmul.mubr.msk.f32.vlgmr.msra.gmra.mrb[4].mxu1 %vm217_vm2, %v585_v24  ;;  %2768 = vmatmul.mubr.msk.f32.vlgmr.msra.gmra.mrb[4].mxu0 %vm217_vm2, %v585_v24 }
 0x5fa   :  { %3003 = vmatpush3.bf16.msra.mxu1 %v3644_v41  ;;  %2756 = vmatprep.mubr.msk.f32.mxu1 %vm3460_vm0, %v3461_v1 }
 0x5fb   :  { %3004 = vmatprep.subr.bf16.mxu1 %v3459_v0  ;;  %3015 = vmatpush3.bf16.msra.mxu0 %v3634_v33 }
 0x5fc   :  { %3016 = vmatprep.subr.bf16.mxu0 %v3459_v0  ;;  %2778 = vmatprep.mubr.msk.f32.mxu0 %vm3460_vm0, %v3461_v1 }
 0x5fe   :  { %3006 = vmatpush3.bf16.msra.mxu1 %v3649_v45 }
 0x5ff   :  { %3025 = vmatprep.subr.bf16.mxu1 %v3459_v0  ;;  %3018 = vmatpush3.bf16.msra.mxu0 %v3637_v35 }
 0x600   :  { %3019 = vmatprep.subr.bf16.mxu0 %v3459_v0 }
 0x602   :  { %v665_v25 = vpop.permute.xlu1 %664 }
 0x603   :  { %2757 = vmatmul.mubr.msk.f32.vlgmr.msra.gmra.mrb[4].mxu1 %vm217_vm2, %v665_v25 }
 0x604   :  { %3027 = vmatpush3.bf16.msra.mxu1 %v3608_v8  ;;  %2800 = vmatprep.mubr.msk.f32.mxu1 %vm3460_vm0, %v3461_v1 }
 0x605   :  { %3028 = vmatprep.subr.bf16.mxu1 %v3459_v0 }
 0x608   :  { %3030 = vmatpush3.bf16.msra.mxu1 %v3611_v11 }
 0x609   :  { %3031 = vmatprep.subr.bf16.mxu1 %v3459_v0 }
 0x6cc   :  { %v830_v27 = vpop.f32.mrb[4].mxu0 }
 0x6cd   :  { %v834_v28 = vadd.f32 %v830_v27, %v763_v26  ;;  %v2769_v29 = vpop.f32.mrb[5].mxu0 }
 0x6cf   :  { %3183 = vtanh.f32 %v834_v28  ;;  %v2528_v37 = vmul.f32 -1.442695, %v834_v28 }
 0x6d6   :  { %v734_v30 = vpop.f32.mrb[4].mxu1 }
 0x6d7   :  { %v3122_v31 = vadd.f32 %v734_v30, %v3672_v50  ;;  %v2758_v32 = vpop.f32.mrb[5].mxu1 }
 0x6d9   :  { %v3184_v34 = vpop.eup %3183  ;;  %3185 = vtanh.f32 %v3122_v31  ;;  %v2526_v38 = vmul.f32 -1.442695, %v3122_v31 }
 0x6da   :  { %844 = vrot.lane.b32.xlu0 %v3184_v34, %s3462_s20  ;;  %3187 = vpow2.f32 %v2528_v37 }
 0x6db   :  { %3189 = vpow2.f32 %v2526_v38 }
 0x6e3   :  { %v3186_v36 = vpop.eup %3185 }
 0x6e4   :  { %748 = vrot.lane.b32.xlu1 %v3186_v36, %s3462_s20  ;;  %v3188_v39 = vpop.eup %3187 }
 0x6e5   :  { %v838_v40 = vadd.f32 1.0, %v3188_v39  ;;  %v3190_v42 = vpop.eup %3189 }
 0x6e6   :  { %v742_v43 = vadd.f32 1.0, %v3190_v42 }
 0x6e7   :  { %3191 = vrcp.f32 %v838_v40 }
 0x6e8   :  { %3193 = vrcp.f32 %v742_v43 }
 0x6f1   :  { %v3192_v44 = vpop.eup %3191 }
 0x6f2   :  { %v3194_v48 = vpop.eup %3193  ;;  %v842_v52 = vmul.f32 %v3192_v44, %v3680_v9 }
 0x6f3   :  { %v746_v55 = vmul.f32 %v3194_v48, %v3683_v13 }
 0x74c   :  { %v845_v46 = vpop.permute.xlu0 %844 }
 0x74d   :  { %v847_v47 = vmul.f32 %v3192_v44, %v845_v46 }
 0x74f   :  { %849 = vrot.lane.b32.xlu0 %v847_v47, %s3462_s20 }
 0x756   :  { %v749_v49 = vpop.permute.xlu1 %748 }
 0x757   :  { %v751_v51 = vmul.f32 %v3194_v48, %v749_v49 }
 0x759   :  { %753 = vrot.lane.b32.xlu1 %v751_v51, %s3462_s20 }
 0x7c1   :  { %v850_v53 = vpop.permute.xlu0 %849 }
 0x7c2   :  { %v3720_v54 = vadd.f32 %v850_v53, %v842_v52 }
 0x7c4   :  { %3195 = vtanh.f32 %v3720_v54 }
 0x7cb   :  { %v754_v56 = vpop.permute.xlu1 %753 }
 0x7cc   :  { %v3724_v57 = vadd.f32 %v754_v56, %v746_v55 }
 0x7ce   :  { %v3196_v58 = vpop.eup %3195  ;;  %3197 = vtanh.f32 %v3724_v57 }
 0x7cf   :  { %855 = vrot.lane.b32.xlu0 %v3196_v58, %s3462_s20 }
 0x7d8   :  { %v3198_v59 = vpop.eup %3197 }
 0x7d9   :  { %759 = vrot.lane.b32.xlu1 %v3198_v59, %s3462_s20 }
 0x841   :  { %v856_v60 = vpop.permute.xlu0 %855 }
 0x842   :  { %v858_v61 = vmul.f32 %v3192_v44, %v856_v60 }
 0x844   :  { %860 = vrot.lane.b32.xlu0 %v858_v61, %s3463_s3 }
 0x84b   :  { %v760_v62 = vpop.permute.xlu1 %759 }
 0x84c   :  { %v762_v63 = vmul.f32 %v3194_v48, %v760_v62  ;;  %v1315_v48 = vld [vmem:[#allocation2 + $0x4] sm:$0x1] }
 0x84e   :  { %v939_v2 = vrot.slane %v762_v63, %v3689_v20 }
 0x850   :  { %940 = vrot.lane.b32.xlu1 %v939_v2, %s3463_s3 }
 0x8b6   :  { %v861_v3 = vpop.permute.xlu0 %860 }
 0x8b7   :  { %2779 = vmatmul.mubr.msk.f32.vlgmr.msra.gmra.mrb[6].mxu0 %vm217_vm2, %v861_v3  ;;  %2801 = vmatmul.mubr.msk.f32.vlgmr.msra.gmra.mrb[6].mxu1 %vm217_vm2, %v861_v3 }
 0x8b8   :  { %3021 = vmatpush3.bf16.msra.mxu0 %v3644_v41  ;;  %2789 = vmatprep.mubr.msk.f32.mxu0 %vm3460_vm0, %v3461_v1 }
 0x8b9   :  { %3022 = vmatprep.subr.bf16.mxu0 %v3459_v0  ;;  %3033 = vmatpush3.bf16.msra.mxu1 %v3634_v33 }
 0x8ba   :  { %3034 = vmatprep.subr.bf16.mxu1 %v3459_v0  ;;  %2811 = vmatprep.mubr.msk.f32.mxu1 %vm3460_vm0, %v3461_v1 }
 0x8bc   :  { %3024 = vmatpush3.bf16.msra.mxu0 %v3649_v45 }
 0x8bd   :  { %3043 = vmatprep.subr.bf16.mxu0 %v3459_v0  ;;  %3036 = vmatpush3.bf16.msra.mxu1 %v3637_v35 }
 0x8be   :  { %3037 = vmatprep.subr.bf16.mxu1 %v3459_v0 }
 0x8c2   :  { %v941_v4 = vpop.permute.xlu1 %940 }
 0x8c3   :  { %2790 = vmatmul.mubr.msk.f32.vlgmr.msra.gmra.mrb[6].mxu0 %vm217_vm2, %v941_v4 }
 0x8c4   :  { %3045 = vmatpush3.bf16.msra.mxu0 %v3608_v8  ;;  %2833 = vmatprep.mubr.msk.f32.mxu0 %vm3460_vm0, %v3461_v1 }
 0x8c5   :  { %3046 = vmatprep.subr.bf16.mxu0 %v3459_v0 }
 0x8c8   :  { %3048 = vmatpush3.bf16.msra.mxu0 %v3611_v11 }
 0x8c9   :  { %3049 = vmatprep.subr.bf16.mxu0 %v3459_v0 }
 0x98a   :  { %v1106_v6 = vpop.f32.mrb[6].mxu1 }
 0x98b   :  { %v1110_v7 = vadd.f32 %v1106_v6, %v1039_v5  ;;  %v2802_v9 = vpop.f32.mrb[7].mxu1 }
 0x98d   :  { %3199 = vtanh.f32 %v1110_v7  ;;  %v2533_v16 = vmul.f32 -1.442695, %v1110_v7 }
 0x996   :  { %v1010_v10 = vpop.f32.mrb[6].mxu0 }
 0x997   :  { %v3200_v12 = vpop.eup %3199  ;;  %v3123_v13 = vadd.f32 %v1010_v10, %v3672_v50  ;;  %v2791_v14 = vpop.f32.mrb[7].mxu0 }
 0x998   :  { %1120 = vrot.lane.b32.xlu0 %v3200_v12, %s3462_s20 }
 0x999   :  { %3201 = vtanh.f32 %v3123_v13  ;;  %v2531_v17 = vmul.f32 -1.442695, %v3123_v13 }
 0x99a   :  { %3203 = vpow2.f32 %v2533_v16 }
 0x99b   :  { %3205 = vpow2.f32 %v2531_v17 }
 0x9a3   :  { %v3202_v15 = vpop.eup %3201 }
 0x9a4   :  { %1024 = vrot.lane.b32.xlu1 %v3202_v15, %s3462_s20  ;;  %v3204_v18 = vpop.eup %3203 }
 0x9a5   :  { %v1114_v19 = vadd.f32 1.0, %v3204_v18  ;;  %v3206_v21 = vpop.eup %3205 }
 0x9a6   :  { %v1018_v22 = vadd.f32 1.0, %v3206_v21 }
 0x9a7   :  { %3207 = vrcp.f32 %v1114_v19 }
 0x9a8   :  { %3209 = vrcp.f32 %v1018_v22 }
 0x9b1   :  { %v3208_v23 = vpop.eup %3207 }
 0x9b2   :  { %v3210_v26 = vpop.eup %3209  ;;  %v1118_v29 = vmul.f32 %v3208_v23, %v3720_v54 }
 0x9b3   :  { %v1022_v32 = vmul.f32 %v3210_v26, %v3724_v57 }
 0xa0a   :  { %v1121_v24 = vpop.permute.xlu0 %1120 }
 0xa0b   :  { %v1123_v25 = vmul.f32 %v3208_v23, %v1121_v24 }
 0xa0d   :  { %1125 = vrot.lane.b32.xlu0 %v1123_v25, %s3462_s20 }
 0xa16   :  { %v1025_v27 = vpop.permute.xlu1 %1024 }
 0xa17   :  { %v1027_v28 = vmul.f32 %v3210_v26, %v1025_v27 }
 0xa19   :  { %1029 = vrot.lane.b32.xlu1 %v1027_v28, %s3462_s20 }
 0xa7f   :  { %v1126_v30 = vpop.permute.xlu0 %1125 }
 0xa80   :  { %v3759_v31 = vadd.f32 %v1126_v30, %v1118_v29 }
 0xa82   :  { %3211 = vtanh.f32 %v3759_v31 }
 0xa8b   :  { %v1030_v34 = vpop.permute.xlu1 %1029 }
 0xa8c   :  { %v3212_v36 = vpop.eup %3211  ;;  %v3763_v37 = vadd.f32 %v1030_v34, %v1022_v32 }
 0xa8d   :  { %1131 = vrot.lane.b32.xlu0 %v3212_v36, %s3462_s20 }
 0xa8e   :  { %3213 = vtanh.f32 %v3763_v37 }
 0xa98   :  { %v3214_v38 = vpop.eup %3213 }
 0xa99   :  { %1035 = vrot.lane.b32.xlu1 %v3214_v38, %s3462_s20 }
 0xaff   :  { %v1132_v39 = vpop.permute.xlu0 %1131 }
 0xb00   :  { %v1134_v40 = vmul.f32 %v3208_v23, %v1132_v39 }
 0xb02   :  { %1136 = vrot.lane.b32.xlu0 %v1134_v40, %s3463_s3 }
 0xb0b   :  { %v1036_v42 = vpop.permute.xlu1 %1035 }
 0xb0c   :  { %v1038_v43 = vmul.f32 %v3210_v26, %v1036_v42  ;;  %v1591_v26 = vld [vmem:[#allocation2 + $0x5] sm:$0x1] }
 0xb0e   :  { %v1215_v44 = vrot.slane %v1038_v43, %v3689_v20 }
 0xb10   :  { %1216 = vrot.lane.b32.xlu1 %v1215_v44, %s3463_s3 }
 0xb74   :  { %v1137_v46 = vpop.permute.xlu0 %1136 }
 0xb75   :  { %2812 = vmatmul.mubr.msk.f32.vlgmr.msra.gmra.mrb[8].mxu1 %vm217_vm2, %v1137_v46  ;;  %2834 = vmatmul.mubr.msk.f32.vlgmr.msra.gmra.mrb[8].mxu0 %vm217_vm2, %v1137_v46 }
 0xb76   :  { %3039 = vmatpush3.bf16.msra.mxu1 %v3644_v41  ;;  %2822 = vmatprep.mubr.msk.f32.mxu1 %vm3460_vm0, %v3461_v1 }
 0xb77   :  { %3040 = vmatprep.subr.bf16.mxu1 %v3459_v0  ;;  %3051 = vmatpush3.bf16.msra.mxu0 %v3634_v33 }
 0xb78   :  { %3052 = vmatprep.subr.bf16.mxu0 %v3459_v0  ;;  %2844 = vmatprep.mubr.msk.f32.mxu0 %vm3460_vm0, %v3461_v1 }
 0xb7a   :  { %3042 = vmatpush3.bf16.msra.mxu1 %v3649_v45 }
 0xb7b   :  { %3061 = vmatprep.subr.bf16.mxu1 %v3459_v0  ;;  %3054 = vmatpush3.bf16.msra.mxu0 %v3637_v35 }
 0xb7c   :  { %3055 = vmatprep.subr.bf16.mxu0 %v3459_v0 }
 0xb82   :  { %v1217_v47 = vpop.permute.xlu1 %1216 }
 0xb83   :  { %2823 = vmatmul.mubr.msk.f32.vlgmr.msra.gmra.mrb[8].mxu1 %vm217_vm2, %v1217_v47 }
 0xb84   :  { %3063 = vmatpush3.bf16.msra.mxu1 %v3608_v8  ;;  %2866 = vmatprep.mubr.msk.f32.mxu1 %vm3460_vm0, %v3461_v1 }
 0xb85   :  { %3064 = vmatprep.subr.bf16.mxu1 %v3459_v0 }
 0xb88   :  { %3066 = vmatpush3.bf16.msra.mxu1 %v3611_v11 }
 0xb89   :  { %3067 = vmatprep.subr.bf16.mxu1 %v3459_v0 }
 0xc48   :  { %v1382_v49 = vpop.f32.mrb[8].mxu0 }
 0xc49   :  { %v1386_v51 = vadd.f32 %v1382_v49, %v1315_v48  ;;  %v2835_v52 = vpop.f32.mrb[9].mxu0 }
 0xc4b   :  { %3215 = vtanh.f32 %v1386_v51  ;;  %v2538_v58 = vmul.f32 -1.442695, %v1386_v51 }
 0xc55   :  { %v3216_v53 = vpop.eup %3215 }
 0xc56   :  { %v1286_v54 = vpop.f32.mrb[8].mxu1  ;;  %1396 = vrot.lane.b32.xlu0 %v3216_v53, %s3462_s20 }
 0xc57   :  { %v3124_v55 = vadd.f32 %v1286_v54, %v3672_v50  ;;  %v2824_v56 = vpop.f32.mrb[9].mxu1 }
 0xc59   :  { %3217 = vtanh.f32 %v3124_v55  ;;  %v2536_v60 = vmul.f32 -1.442695, %v3124_v55 }
 0xc5a   :  { %3219 = vpow2.f32 %v2538_v58 }
 0xc5b   :  { %3221 = vpow2.f32 %v2536_v60 }
 0xc63   :  { %v3218_v57 = vpop.eup %3217 }
 0xc64   :  { %1300 = vrot.lane.b32.xlu1 %v3218_v57, %s3462_s20  ;;  %v3220_v59 = vpop.eup %3219 }
 0xc65   :  { %v1390_v61 = vadd.f32 1.0, %v3220_v59  ;;  %v3222_v62 = vpop.eup %3221 }
 0xc66   :  { %v1294_v2 = vadd.f32 1.0, %v3222_v62 }
 0xc67   :  { %3223 = vrcp.f32 %v1390_v61 }
 0xc68   :  { %3225 = vrcp.f32 %v1294_v2 }
 0xc71   :  { %v3224_v63 = vpop.eup %3223 }
 0xc72   :  { %v3226_v5 = vpop.eup %3225  ;;  %v1394_v9 = vmul.f32 %v3224_v63, %v3759_v31 }
 0xc73   :  { %v1298_v14 = vmul.f32 %v3226_v5, %v3763_v37 }
 0xcc8   :  { %v1397_v3 = vpop.permute.xlu0 %1396 }
 0xcc9   :  { %v1399_v4 = vmul.f32 %v3224_v63, %v1397_v3 }
 0xccb   :  { %1401 = vrot.lane.b32.xlu0 %v1399_v4, %s3462_s20 }
 0xcd6   :  { %v1301_v6 = vpop.permute.xlu1 %1300 }
 0xcd7   :  { %v1303_v7 = vmul.f32 %v3226_v5, %v1301_v6 }
 0xcd9   :  { %1305 = vrot.lane.b32.xlu1 %v1303_v7, %s3462_s20 }
 0xd3d   :  { %v1402_v10 = vpop.permute.xlu0 %1401 }
 0xd3e   :  { %v3798_v12 = vadd.f32 %v1402_v10, %v1394_v9 }
 0xd40   :  { %3227 = vtanh.f32 %v3798_v12 }
 0xd4a   :  { %v3228_v13 = vpop.eup %3227 }
 0xd4b   :  { %v1306_v15 = vpop.permute.xlu1 %1305  ;;  %1407 = vrot.lane.b32.xlu0 %v3228_v13, %s3462_s20 }
 0xd4c   :  { %v3803_v16 = vadd.f32 %v1306_v15, %v1298_v14 }
 0xd4e   :  { %3229 = vtanh.f32 %v3803_v16 }
 0xd58   :  { %v3230_v17 = vpop.eup %3229 }
 0xd59   :  { %1311 = vrot.lane.b32.xlu1 %v3230_v17, %s3462_s20 }
 0xdbd   :  { %v1408_v18 = vpop.permute.xlu0 %1407 }
 0xdbe   :  { %v1410_v19 = vmul.f32 %v3224_v63, %v1408_v18 }
 0xdc0   :  { %1412 = vrot.lane.b32.xlu0 %v1410_v19, %s3463_s3 }
 0xdcb   :  { %v1312_v21 = vpop.permute.xlu1 %1311 }
 0xdcc   :  { %v1314_v22 = vmul.f32 %v3226_v5, %v1312_v21  ;;  %v1867_v5 = vld [vmem:[#allocation2 + $0x6] sm:$0x1] }
 0xdce   :  { %v1491_v23 = vrot.slane %v1314_v22, %v3689_v20 }
 0xdd0   :  { %1492 = vrot.lane.b32.xlu1 %v1491_v23, %s3463_s3 }
 0xe32   :  { %v1413_v24 = vpop.permute.xlu0 %1412 }
 0xe33   :  { %2845 = vmatmul.mubr.msk.f32.vlgmr.msra.gmra.mrb[10].mxu0 %vm217_vm2, %v1413_v24  ;;  %2867 = vmatmul.mubr.msk.f32.vlgmr.msra.gmra.mrb[10].mxu1 %vm217_vm2, %v1413_v24 }
 0xe34   :  { %3057 = vmatpush3.bf16.msra.mxu0 %v3644_v41  ;;  %2855 = vmatprep.mubr.msk.f32.mxu0 %vm3460_vm0, %v3461_v1 }
 0xe35   :  { %3058 = vmatprep.subr.bf16.mxu0 %v3459_v0  ;;  %3069 = vmatpush3.bf16.msra.mxu1 %v3634_v33 }
 0xe36   :  { %3070 = vmatprep.subr.bf16.mxu1 %v3459_v0  ;;  %2877 = vmatprep.mubr.msk.f32.mxu1 %vm3460_vm0, %v3461_v1 }
 0xe38   :  { %3060 = vmatpush3.bf16.msra.mxu0 %v3649_v45 }
 0xe39   :  { %3079 = vmatprep.subr.bf16.mxu0 %v3459_v0  ;;  %3072 = vmatpush3.bf16.msra.mxu1 %v3637_v35 }
 0xe3a   :  { %3073 = vmatprep.subr.bf16.mxu1 %v3459_v0 }
 0xe42   :  { %v1493_v25 = vpop.permute.xlu1 %1492 }
 0xe43   :  { %2856 = vmatmul.mubr.msk.f32.vlgmr.msra.gmra.mrb[10].mxu0 %vm217_vm2, %v1493_v25 }
 0xe44   :  { %3081 = vmatpush3.bf16.msra.mxu0 %v3608_v8  ;;  %2899 = vmatprep.mubr.msk.f32.mxu0 %vm3460_vm0, %v3461_v1 }
 0xe45   :  { %3082 = vmatprep.subr.bf16.mxu0 %v3459_v0 }
 0xe48   :  { %3084 = vmatpush3.bf16.msra.mxu0 %v3611_v11 }
 0xe49   :  { %3085 = vmatprep.subr.bf16.mxu0 %v3459_v0 }
 0xf06   :  { %v1658_v27 = vpop.f32.mrb[10].mxu1 }
 0xf07   :  { %v1662_v28 = vadd.f32 %v1658_v27, %v1591_v26  ;;  %v2868_v29 = vpop.f32.mrb[11].mxu1 }
 0xf09   :  { %3231 = vtanh.f32 %v1662_v28  ;;  %v2543_v37 = vmul.f32 -1.442695, %v1662_v28 }
 0xf13   :  { %v3232_v30 = vpop.eup %3231 }
 0xf14   :  { %1672 = vrot.lane.b32.xlu0 %v3232_v30, %s3462_s20 }
 0xf16   :  { %v1562_v31 = vpop.f32.mrb[10].mxu0 }
 0xf17   :  { %v3125_v32 = vadd.f32 %v1562_v31, %v3672_v50  ;;  %v2857_v34 = vpop.f32.mrb[11].mxu0 }
 0xf19   :  { %3233 = vtanh.f32 %v3125_v32  ;;  %v2541_v39 = vmul.f32 -1.442695, %v3125_v32 }
 0xf1a   :  { %3235 = vpow2.f32 %v2543_v37 }
 0xf1b   :  { %3237 = vpow2.f32 %v2541_v39 }
 0xf23   :  { %v3234_v36 = vpop.eup %3233 }
 0xf24   :  { %1576 = vrot.lane.b32.xlu1 %v3234_v36, %s3462_s20  ;;  %v3236_v38 = vpop.eup %3235 }
 0xf25   :  { %v1666_v40 = vadd.f32 1.0, %v3236_v38  ;;  %v3238_v42 = vpop.eup %3237 }
 0xf26   :  { %v1570_v47 = vadd.f32 1.0, %v3238_v42 }
 0xf27   :  { %3239 = vrcp.f32 %v1666_v40 }
 0xf28   :  { %3241 = vrcp.f32 %v1570_v47 }
 0xf31   :  { %v3240_v43 = vpop.eup %3239 }
 0xf32   :  { %v3242_v48 = vpop.eup %3241  ;;  %v1670_v52 = vmul.f32 %v3240_v43, %v3798_v12 }
 0xf33   :  { %v1574_v56 = vmul.f32 %v3242_v48, %v3803_v16 }
 0xf86   :  { %v1673_v44 = vpop.permute.xlu0 %1672 }
 0xf87   :  { %v1675_v46 = vmul.f32 %v3240_v43, %v1673_v44 }
 0xf89   :  { %1677 = vrot.lane.b32.xlu0 %v1675_v46, %s3462_s20 }
 0xf96   :  { %v1577_v49 = vpop.permute.xlu1 %1576 }
 0xf97   :  { %v1579_v51 = vmul.f32 %v3242_v48, %v1577_v49 }
 0xf99   :  { %1581 = vrot.lane.b32.xlu1 %v1579_v51, %s3462_s20 }
 0xffb   :  { %v1678_v53 = vpop.permute.xlu0 %1677 }
 0xffc   :  { %v3837_v54 = vadd.f32 %v1678_v53, %v1670_v52 }
 0xffe   :  { %3243 = vtanh.f32 %v3837_v54 }
0x1008   :  { %v3244_v55 = vpop.eup %3243 }
0x1009   :  { %1683 = vrot.lane.b32.xlu0 %v3244_v55, %s3462_s20 }
0x100b   :  { %v1582_v57 = vpop.permute.xlu1 %1581 }
0x100c   :  { %v3842_v58 = vadd.f32 %v1582_v57, %v1574_v56 }
0x100e   :  { %3245 = vtanh.f32 %v3842_v58 }
0x1018   :  { %v3246_v59 = vpop.eup %3245 }
0x1019   :  { %1587 = vrot.lane.b32.xlu1 %v3246_v59, %s3462_s20 }
0x107b   :  { %v1684_v60 = vpop.permute.xlu0 %1683 }
0x107c   :  { %v1686_v61 = vmul.f32 %v3240_v43, %v1684_v60 }
0x107e   :  { %1688 = vrot.lane.b32.xlu0 %v1686_v61, %s3463_s3 }
0x108b   :  { %v1588_v62 = vpop.permute.xlu1 %1587 }
0x108c   :  { %v1590_v63 = vmul.f32 %v3242_v48, %v1588_v62 }
0x108e   :  { %v1767_v2 = vrot.slane %v1590_v63, %v3689_v20 }
0x1090   :  { %1768 = vrot.lane.b32.xlu1 %v1767_v2, %s3463_s3 }
0x10f0   :  { %v1689_v3 = vpop.permute.xlu0 %1688 }
0x10f1   :  { %2878 = vmatmul.mubr.msk.f32.vlgmr.msra.gmra.mrb[12].mxu1 %vm217_vm2, %v1689_v3  ;;  %2900 = vmatmul.mubr.msk.f32.vlgmr.msra.gmra.mrb[12].mxu0 %vm217_vm2, %v1689_v3 }
0x10f2   :  { %3075 = vmatpush3.bf16.msra.mxu1 %v3644_v41  ;;  %2888 = vmatprep.mubr.msk.f32.mxu1 %vm3460_vm0, %v3461_v1 }
0x10f3   :  { %3076 = vmatprep.subr.bf16.mxu1 %v3459_v0  ;;  %3087 = vmatpush3.bf16.msra.mxu0 %v3634_v33 }
0x10f4   :  { %3088 = vmatprep.subr.bf16.mxu0 %v3459_v0  ;;  %2910 = vmatprep.mubr.msk.f32.mxu0 %vm3460_vm0, %v3461_v1 }
0x10f6   :  { %3078 = vmatpush3.bf16.msra.mxu1 %v3649_v45 }
0x10f7   :  { %3097 = vmatprep.subr.bf16.mxu1 %v3459_v0  ;;  %3090 = vmatpush3.bf16.msra.mxu0 %v3637_v35 }
0x10f8   :  { %3091 = vmatprep.subr.bf16.mxu0 %v3459_v0 }
0x1102   :  { %v1769_v4 = vpop.permute.xlu1 %1768 }
0x1103   :  { %2889 = vmatmul.mubr.msk.f32.vlgmr.msra.gmra.mrb[12].mxu1 %vm217_vm2, %v1769_v4 }
0x1104   :  { %3099 = vmatpush3.bf16.msra.mxu1 %v3608_v8  ;;  %2932 = vmatprep.mubr.msk.f32.mxu1 %vm3460_vm0, %v3461_v1 }
0x1105   :  { %3100 = vmatprep.subr.bf16.mxu1 %v3459_v0 }
0x1108   :  { %3102 = vmatpush3.bf16.msra.mxu1 %v3611_v11 }
0x1109   :  { %3103 = vmatprep.subr.bf16.mxu1 %v3459_v0 }
0x11c4   :  { %v1934_v6 = vpop.f32.mrb[12].mxu0 }
0x11c5   :  { %v1938_v7 = vadd.f32 %v1934_v6, %v1867_v5  ;;  %v2901_v9 = vpop.f32.mrb[13].mxu0 }
0x11c7   :  { %3247 = vtanh.f32 %v1938_v7  ;;  %v2548_v15 = vmul.f32 -1.442695, %v1938_v7 }
0x11d1   :  { %v3248_v10 = vpop.eup %3247 }
0x11d2   :  { %1948 = vrot.lane.b32.xlu0 %v3248_v10, %s3462_s20 }
0x11d6   :  { %v1838_v12 = vpop.f32.mrb[12].mxu1 }
0x11d7   :  { %v3126_v8 = vadd.f32 %v1838_v12, %v3672_v50  ;;  %v2890_v13 = vpop.f32.mrb[13].mxu1 }
0x11d9   :  { %3249 = vtanh.f32 %v3126_v8  ;;  %v2546_v17 = vmul.f32 -1.442695, %v3126_v8 }
0x11da   :  { %3251 = vpow2.f32 %v2548_v15 }
0x11e3   :  { %v3250_v14 = vpop.eup %3249 }
0x11e4   :  { %1852 = vrot.lane.b32.xlu1 %v3250_v14, %s3462_s20  ;;  %v3252_v11 = vpop.eup %3251 }
0x11e5   :  { %v1942_v16 = vadd.f32 1.0, %v3252_v11 }
0x11e7   :  { %3253 = vrcp.f32 %v1942_v16 }
0x11e8   :  { %3255 = vpow2.f32 %v2546_v17 }
0x11f1   :  { %v3254_v18 = vpop.eup %3253 }
0x11f2   :  { %v3256_v21 = vpop.eup %3255  ;;  %v1946_v27 = vmul.f32 %v3254_v18, %v3837_v54 }
0x11f3   :  { %v1846_v23 = vadd.f32 1.0, %v3256_v21 }
0x11f5   :  { %3257 = vrcp.f32 %v1846_v23 }
0x11ff   :  { %v3258_v24 = vpop.eup %3257 }
0x1200   :  { %v1850_v31 = vmul.f32 %v3258_v24, %v3842_v58 }
0x1244   :  { %v1949_v19 = vpop.permute.xlu0 %1948 }
0x1245   :  { %v1951_v22 = vmul.f32 %v3254_v18, %v1949_v19 }
0x1247   :  { %1953 = vrot.lane.b32.xlu0 %v1951_v22, %s3462_s20 }
0x1256   :  { %v1853_v25 = vpop.permute.xlu1 %1852 }
0x1257   :  { %v1855_v26 = vmul.f32 %v3258_v24, %v1853_v25 }
0x1259   :  { %1857 = vrot.lane.b32.xlu1 %v1855_v26, %s3462_s20 }
0x12b9   :  { %v1954_v28 = vpop.permute.xlu0 %1953 }
0x12ba   :  { %v3876_v29 = vadd.f32 %v1954_v28, %v1946_v27 }
0x12bc   :  { %3259 = vtanh.f32 %v3876_v29 }
0x12c6   :  { %v3260_v30 = vpop.eup %3259 }
0x12c7   :  { %1959 = vrot.lane.b32.xlu0 %v3260_v30, %s3462_s20  ;;  %v130_v30 = vld [vmem:[#allocation12 + $0x8] sm:$0xff] }
0x12cb   :  { %v1858_v32 = vpop.permute.xlu1 %1857 }
0x12cc   :  { %v3881_v34 = vadd.f32 %v1858_v32, %v1850_v31  ;;  %v131_v31 = vld [vmem:[#allocation12 + $0x10] sm:$0xff] }
0x12ce   :  { %3261 = vtanh.f32 %v3881_v34 }
0x12d8   :  { %v3262_v36 = vpop.eup %3261 }
0x12d9   :  { %1863 = vrot.lane.b32.xlu1 %v3262_v36, %s3462_s20 }
0x1339   :  { %v1960_v37 = vpop.permute.xlu0 %1959 }
0x133a   :  { %v1962_v38 = vmul.f32 %v3254_v18, %v1960_v37 }
0x133c   :  { %1964 = vrot.lane.b32.xlu0 %v1962_v38, %s3463_s3 }
0x134b   :  { %v1864_v39 = vpop.permute.xlu1 %1863 }
0x134c   :  { %v1866_v40 = vmul.f32 %v3258_v24, %v1864_v39 }
0x134e   :  { %v2043_v42 = vrot.slane %v1866_v40, %v3689_v20 }
0x1350   :  { %2044 = vrot.lane.b32.xlu1 %v2043_v42, %s3463_s3 }
0x13ae   :  { %v1965_v43 = vpop.permute.xlu0 %1964 }
0x13af   :  { %2911 = vmatmul.mubr.msk.f32.vlgmr.msra.gmra.mrb[14].mxu0 %vm217_vm2, %v1965_v43  ;;  %2933 = vmatmul.mubr.msk.f32.vlgmr.msra.gmra.mrb[14].mxu1 %vm217_vm2, %v1965_v43  ;;  %v133_v43 = vld [vmem:[%s3955_s8] sm:$0x1] }
0x13b0   :  { %3093 = vmatpush3.bf16.msra.mxu0 %v3644_v41  ;;  %2921 = vmatprep.mubr.msk.f32.mxu0 %vm3460_vm0, %v3461_v1 }
0x13b1   :  { %3094 = vmatprep.subr.bf16.mxu0 %v3459_v0  ;;  %3105 = vmatpush3.bf16.msra.mxu1 %v3634_v33  ;;  %v2143_v33 = vld [vmem:[#allocation2 + $0x7] sm:$0x1] }
0x13b2   :  { %3106 = vmatprep.subr.bf16.mxu1 %v3459_v0  ;;  %2943 = vmatprep.mubr.msk.f32.mxu1 %vm3460_vm0, %v3461_v1 }
0x13b4   :  { %3096 = vmatpush3.bf16.msra.mxu0 %v3649_v45 }
0x13b5   :  { %3108 = vmatpush3.bf16.msra.mxu1 %v3637_v35  ;;  %3115 = vmatprep.subr.bf16.mxu0 %v3459_v0 }
0x13b6   :  { %3109 = vmatprep.subr.bf16.mxu1 %v3459_v0 }
0x13c2   :  { %v2045_v44 = vpop.permute.xlu1 %2044 }
0x13c3   :  { %2922 = vmatmul.mubr.msk.f32.vlgmr.msra.gmra.mrb[14].mxu0 %vm217_vm2, %v2045_v44 }
0x13c4   :  { %2965 = vmatprep.mubr.msk.f32.mxu0 %vm3460_vm0, %v3461_v1 }
0x1482   :  { %v2210_v46 = vpop.f32.mrb[14].mxu1 }
0x1483   :  { %v2214_v47 = vadd.f32 %v2210_v46, %v2143_v33  ;;  %v2934_v48 = vpop.f32.mrb[15].mxu1 }
0x1485   :  { %3263 = vtanh.f32 %v2214_v47  ;;  %v2553_v54 = vmul.f32 -1.442695, %v2214_v47 }
0x148f   :  { %v3264_v49 = vpop.eup %3263 }
0x1490   :  { %2224 = vrot.lane.b32.xlu0 %v3264_v49, %s3462_s20 }
0x1496   :  { %v2114_v51 = vpop.f32.mrb[14].mxu0 }
0x1497   :  { %v3127_v35 = vadd.f32 %v2114_v51, %v3672_v50  ;;  %v2923_v52 = vpop.f32.mrb[15].mxu0 }
0x1499   :  { %3265 = vtanh.f32 %v3127_v35  ;;  %v2551_v57 = vmul.f32 -1.442695, %v3127_v35 }
0x149a   :  { %3267 = vpow2.f32 %v2553_v54 }
0x14a3   :  { %v3266_v53 = vpop.eup %3265 }
0x14a4   :  { %2128 = vrot.lane.b32.xlu1 %v3266_v53, %s3462_s20  ;;  %v3268_v55 = vpop.eup %3267 }
0x14a5   :  { %v2218_v56 = vadd.f32 1.0, %v3268_v55 }
0x14a7   :  { %3269 = vrcp.f32 %v2218_v56 }
0x14a8   :  { %3271 = vpow2.f32 %v2551_v57 }
0x14b1   :  { %v3270_v58 = vpop.eup %3269 }
0x14b2   :  { %v3272_v61 = vpop.eup %3271  ;;  %v2222_v4 = vmul.f32 %v3270_v58, %v3876_v29 }
0x14b3   :  { %v2122_v62 = vadd.f32 1.0, %v3272_v61 }
0x14b5   :  { %3273 = vrcp.f32 %v2122_v62 }
0x14bf   :  { %v3274_v63 = vpop.eup %3273 }
0x14c0   :  { %v2126_v9 = vmul.f32 %v3274_v63, %v3881_v34  ;;  %v132_v34 = vld [vmem:[#allocation12 + $0x18] sm:$0xff] }
0x14c1   :  { %v3119_v36 = vpack.c.bf16 %v132_v34, %v131_v31 }
0x1502   :  { %v2225_v59 = vpop.permute.xlu0 %2224 }
0x1503   :  { %v2227_v60 = vmul.f32 %v3270_v58, %v2225_v59 }
0x1505   :  { %2229 = vrot.lane.b32.xlu0 %v2227_v60, %s3462_s20 }
0x1516   :  { %v2129_v2 = vpop.permute.xlu1 %2128 }
0x1517   :  { %v2131_v3 = vmul.f32 %v3274_v63, %v2129_v2 }
0x1519   :  { %2133 = vrot.lane.b32.xlu1 %v2131_v3, %s3462_s20 }
0x1577   :  { %v2230_v5 = vpop.permute.xlu0 %2229 }
0x1578   :  { %v2232_v6 = vadd.f32 %v2230_v5, %v2222_v4 }
0x157a   :  { %3275 = vtanh.f32 %v2232_v6 }
0x1584   :  { %v3276_v7 = vpop.eup %3275 }
0x1585   :  { %2235 = vrot.lane.b32.xlu0 %v3276_v7, %s3462_s20 }
0x158b   :  { %v2134_v10 = vpop.permute.xlu1 %2133 }
0x158c   :  { %v2136_v12 = vadd.f32 %v2134_v10, %v2126_v9 }
0x158e   :  { %3277 = vtanh.f32 %v2136_v12 }
0x1598   :  { %v3278_v8 = vpop.eup %3277 }
0x1599   :  { %2139 = vrot.lane.b32.xlu1 %v3278_v8, %s3462_s20 }
0x15f7   :  { %v2236_v13 = vpop.permute.xlu0 %2235 }
0x15f8   :  { %v2238_v14 = vmul.f32 %v3270_v58, %v2236_v13 }
0x15fa   :  { %2240 = vrot.lane.b32.xlu0 %v2238_v14, %s3463_s3 }
0x160b   :  { %v2140_v15 = vpop.permute.xlu1 %2139 }
0x160c   :  { %v2142_v11 = vmul.f32 %v3274_v63, %v2140_v15 }
0x160e   :  { %v2319_v16 = vrot.slane %v2142_v11, %v3689_v20 }
0x1610   :  { %2320 = vrot.lane.b32.xlu1 %v2319_v16, %s3463_s3 }
0x166c   :  { %v2241_v17 = vpop.permute.xlu0 %2240 }
0x166d   :  { %2944 = vmatmul.mubr.msk.f32.vlgmr.msra.gmra.mrb[16].mxu1 %vm217_vm2, %v2241_v17 }
0x166e   :  { %3111 = vmatpush3.bf16.msra.mxu1 %v3644_v41  ;;  %2954 = vmatprep.mubr.msk.f32.mxu1 %vm3460_vm0, %v3461_v1 }
0x166f   :  { %3112 = vmatprep.subr.bf16.mxu1 %v3459_v0 }
0x1672   :  { %3114 = vmatpush3.bf16.msra.mxu1 %v3649_v45 }
0x1682   :  { %v2321_v18 = vpop.permute.xlu1 %2320 }
0x1683   :  { %2955 = vmatmul.mubr.msk.f32.vlgmr.msra.gmra.mrb[16].mxu1 %vm217_vm2, %v2321_v18 }
0x1756   :  { %v2390_v19 = vpop.f32.mrb[16].mxu1 }
0x1757   :  { %v3128_v21 = vadd.f32 %v2390_v19, %v3672_v50  ;;  %v2956_v22 = vpop.f32.mrb[17].mxu1  ;;  %v129_v50 = vld [vmem:[#allocation12] sm:$0xff] }
0x1758   :  { %v3116_v32 = vpack.c.bf16 %v130_v30, %v129_v50 }
0x1759   :  { %3279 = vtanh.f32 %v3128_v21  ;;  %v2556_v24 = vmul.f32 -1.442695, %v3128_v21 }
0x175a   :  { %3117 = vmatpush3.bf16.msra.mxu0 %v3116_v32 }
0x175b   :  { %3281 = vpow2.f32 %v2556_v24  ;;  %3118 = vmatprep.subr.bf16.mxu0 %v3459_v0 }
0x175e   :  { %3120 = vmatpush3.bf16.msra.mxu0 %v3119_v36 }
0x1763   :  { %v3280_v23 = vpop.eup %3279 }
0x1764   :  { %2404 = vrot.lane.b32.xlu0 %v3280_v23, %s3462_s20 }
0x1765   :  { %v3282_v41 = vpop.eup %3281 }
0x1766   :  { %v2398_v25 = vadd.f32 1.0, %v3282_v41 }
0x1768   :  { %3283 = vrcp.f32 %v2398_v25 }
0x1772   :  { %v3284_v1 = vpop.eup %3283 }
0x1773   :  { %v2402_v45 = vmul.f32 %v3284_v1, %v2136_v12 }
0x17d6   :  { %v2405_v26 = vpop.permute.xlu0 %2404 }
0x17d7   :  { %v2407_v27 = vmul.f32 %v3284_v1, %v2405_v26 }
0x17d9   :  { %2409 = vrot.lane.b32.xlu1 %v2407_v27, %s3462_s20 }
0x184b   :  { %v2410_v28 = vpop.permute.xlu1 %2409 }
0x184c   :  { %v2412_v29 = vadd.f32 %v2410_v28, %v2402_v45 }
0x184e   :  { %3285 = vtanh.f32 %v2412_v29 }
0x1858   :  { %v3286_v37 = vpop.eup %3285 }
0x1859   :  { %2415 = vrot.lane.b32.xlu0 %v3286_v37, %s3462_s20 }
0x18cb   :  { %v2416_v38 = vpop.permute.xlu0 %2415 }
0x18cc   :  { %v2418_v39 = vmul.f32 %v3284_v1, %v2416_v38 }
0x18ce   :  { %v2423_v40 = vrot.slane %v2418_v39, %v3689_v20 }
0x18d0   :  { %2424 = vrot.lane.b32.xlu1 %v2423_v40, %s3463_s3 }
0x1942   :  { %v2425_v42 = vpop.permute.xlu1 %2424 }
0x1943   :  { %2966 = vmatmul.mubr.msk.f32.vlgmr.msra.gmra.mrb[16].mxu0 %vm217_vm2, %v2425_v42 }
0x1a16   :  { %v2494_v0 = vpop.f32.mrb[16].mxu0 }
0x1a17   :  { %v2495_v44 = vadd.f32 %v2494_v0, %v133_v43  ;;  %v2967_v33 = vpop.f32.mrb[17].mxu0 }
0x1a19   :  { %2498 = vst [vmem:[#allocation14] sm:$0x1] %v2495_v44 }
0x1a1a   :  { %3430 = shalt.err (!%p3427_p10)
}
0x1a1b   :  { %s3431_s24 = scalar_lea.hbm %s3956_s9, 16 }
0x1a1c   :  { %p3432_p11 = scmp.ne.s32.totalorder %s3956_s9, %s3431_s24  ;;  %p3435_p12 = scmp.lt.u32.totalorder %s3431_s24, %s3956_s9 }
0x1a1e   :  { %p3437_p13 = pnand %p3435_p12, %p3432_p11 }
0x1a20   :  { %3440 = shalt.err (!%p3437_p13)
}
0x1a21   :  { %2508 = dma.vmem_to_hbm [thread:$0]  %s2506_s21, 16, %s3956_s9, [#allocation5]  }
0x1a22   :  { %3449 = dma.done.wait [#allocation5], 16  }
0x1a23   :  { %3450 = vsyncadd [#allocation5], 4294967280 }
0x1a24   :  { %2512 = vsyncpa [#allocation4], 1 }
0x1a25   :  { %2513 = vsyncpa [#allocation7], 1 }
0x1a26   :  { %2514 = vsyncpa [#allocation10], 1 }
0x1a27   :  { %2515 = vsyncpa [#allocation13], 1 }
0x1a28   :  { %2516 = vsyncpa [#allocation5], 1 }

</bundles_post_ra>
